<compile_context>
chip_gen: v7x
topology: tpu7x:2x2x1
jax: 0.10.0
libtpu: 0.0.40
codegen_flags: <defaults>
</compile_context>

<pallas_src>
import functools

import jax
import jax.numpy as jnp
from jax import lax
from jax.experimental import pallas as pl
from jax.experimental.pallas import tpu as pltpu


# ----------------------------- Pallas kernels ------------------------------

def _full_spec(shape):
    nd = len(shape)
    return pl.BlockSpec(shape, lambda i, _nd=nd: (0,) * _nd)


def _single_call(kernel, out_shape, *arrays):
    """One-shot pallas_call: every operand is a single full-array VMEM block."""
    return pl.pallas_call(
        kernel,
        out_shape=jax.ShapeDtypeStruct(out_shape, jnp.float32),
        grid=(1,),
        in_specs=[_full_spec(a.shape) for a in arrays],
        out_specs=_full_spec(out_shape),
        compiler_params=pltpu.CompilerParams(dimension_semantics=("arbitrary",)),
    )(*arrays)


# K1: conv-as-matmul, channel-major / lane-dense output (C_out, B*Ho*Wo).
def _conv_mm_kernel(p_ref, w_ref, b_ref, o_ref):
    o_ref[...] = (jnp.dot(w_ref[...], p_ref[...],
                          preferred_element_type=jnp.float32) + b_ref[...])


def conv_mm(p_t, w, b):
    return _single_call(_conv_mm_kernel, (w.shape[0], p_t.shape[1]), p_t, w, b)


# K2: maxpool(2,2) + ReLU fused with the next conv's matmul.  The four inputs are the
# im2col patch matrices built from the four 2x2 pool-window slabs; since max/ReLU commute
# with the (pure-index) patch extraction, the in-kernel max+relu equals pooling first.
def _pool_relu_conv_kernel(p0, p1, p2, p3, w_ref, b_ref, o_ref):
    p = jnp.maximum(jnp.maximum(p0[...], p1[...]), jnp.maximum(p2[...], p3[...]))
    p = jnp.maximum(p, 0.0)
    o_ref[...] = (jnp.dot(w_ref[...], p,
                          preferred_element_type=jnp.float32) + b_ref[...])


def pool_relu_conv_mm(patch_slabs, w, b):
    return _single_call(_pool_relu_conv_kernel,
                        (w.shape[0], patch_slabs[0].shape[1]),
                        *patch_slabs, w, b)


# K3: maxpool(2,2) + ReLU fused with fc_loc (Linear(90,32) -> ReLU -> Linear(32,6)).
def _pool_relu_loc_kernel(s0, s1, s2, s3, w1_ref, b1_ref, w2_ref, b2_ref, o_ref):
    xs = jnp.maximum(jnp.maximum(s0[...], s1[...]), jnp.maximum(s2[...], s3[...]))
    xs = jnp.maximum(xs, 0.0)                                    # (B, 90)
    h = jnp.dot(xs, w1_ref[...], preferred_element_type=jnp.float32) + b1_ref[...]
    h = jnp.maximum(h, 0.0)
    o_ref[...] = (jnp.dot(h, w2_ref[...],
                          preferred_element_type=jnp.float32) + b2_ref[...])


def pool_relu_loc(flat_slabs, w1, b1, w2, b2):
    return _single_call(_pool_relu_loc_kernel,
                        (flat_slabs[0].shape[0], w2.shape[1]),
                        *flat_slabs, w1, b1, w2, b2)


# K4: bilinear grid_sample (padding='zeros', align_corners=False), separable form.
def _grid_sample_kernel(x_ref, ix_ref, iy_ref, o_ref, *, H, W):
    HW = H * W
    img = x_ref[0]                        # (H, W) source image
    ix = ix_ref[0]                        # (1, HW) sample x in pixel coords
    iy = iy_ref[0]                        # (1, HW) sample y in pixel coords

    ix0f = jnp.floor(ix)
    iy0f = jnp.floor(iy)
    fx = ix - ix0f
    fy = iy - iy0f
    ix0 = ix0f.astype(jnp.int32)
    iy0 = iy0f.astype(jnp.int32)

    # Column weights Cx[x, p] and row weights Ry[y, p]: each output pixel p has at most
    # two nonzero entries per axis; out-of-range corners never match the iota, so the
    # 'zeros' padding falls out for free.  O(W*HW)+O(H*HW) VPU work vs O(HW^2) before.
    xi = lax.broadcasted_iota(jnp.int32, (W, HW), 0)
    cx = (jnp.where(xi == ix0, 1.0 - fx, 0.0)
          + jnp.where(xi == ix0 + 1, fx, 0.0))                   # (W, HW)
    yi = lax.broadcasted_iota(jnp.int32, (H, HW), 0)
    ry = (jnp.where(yi == iy0, 1.0 - fy, 0.0)
          + jnp.where(yi == iy0 + 1, fy, 0.0))                   # (H, HW)

    # NOTE: kept f32 for exact parity on v5e; on v6e/v7x cx/ry could be built in bfloat16
    # (bf16 VPU + MXU) to halve VPU/VMEM cost.
    t = jnp.dot(img, cx, preferred_element_type=jnp.float32)     # (H, HW) on the MXU
    o_ref[0] = jnp.sum(ry * t, axis=0, keepdims=True)            # XLU sublane reduce


def grid_sample_pallas(x_img, ix, iy, H, W):
    """x_img: (B, H, W); ix, iy: (B, 1, H*W) -> sampled (B, 1, H*W)."""
    B = x_img.shape[0]
    HW = H * W
    kern = functools.partial(_grid_sample_kernel, H=H, W=W)
    img_spec = pl.BlockSpec((1, H, W), lambda b: (b, 0, 0))
    vec_spec = pl.BlockSpec((1, 1, HW), lambda b: (b, 0, 0))
    return pl.pallas_call(
        kern,
        out_shape=jax.ShapeDtypeStruct((B, 1, HW), jnp.float32),
        grid=(B,),
        in_specs=[img_spec, vec_spec, vec_spec],
        out_specs=vec_spec,
        compiler_params=pltpu.CompilerParams(dimension_semantics=("parallel",)),
    )(x_img, ix, iy)


# K5: fused Q head fc1 -> ReLU -> fc2 -> ReLU -> fc3 (intermediates stay in VMEM/vregs).
def _qhead_kernel(x_ref, w1_ref, b1_ref, w2_ref, b2_ref, w3_ref, b3_ref, o_ref):
    h = jnp.dot(x_ref[...], w1_ref[...], preferred_element_type=jnp.float32) + b1_ref[...]
    h = jnp.maximum(h, 0.0)
    h = jnp.dot(h, w2_ref[...], preferred_element_type=jnp.float32) + b2_ref[...]
    h = jnp.maximum(h, 0.0)
    o_ref[...] = (jnp.dot(h, w3_ref[...],
                          preferred_element_type=jnp.float32) + b3_ref[...])


def qhead(x, w1, b1, w2, b2, w3, b3):
    M, K = x.shape
    N = w3.shape[1]
    # Tile the row dimension only when it is big enough to matter (training batches);
    # tiny inference batches run as a single block.
    bm = 256 if (M > 256 and M % 256 == 0) else M
    row_in = pl.BlockSpec((bm, K), lambda i: (i, 0))
    row_out = pl.BlockSpec((bm, N), lambda i: (i, 0))
    return pl.pallas_call(
        _qhead_kernel,
        out_shape=jax.ShapeDtypeStruct((M, N), jnp.float32),
        grid=(M // bm,),
        in_specs=[row_in, _full_spec(w1.shape), _full_spec(b1.shape),
                  _full_spec(w2.shape), _full_spec(b2.shape),
                  _full_spec(w3.shape), _full_spec(b3.shape)],
        out_specs=row_out,
        compiler_params=pltpu.CompilerParams(dimension_semantics=("parallel",)),
    )(x, w1, b1, w2, b2, w3, b3)


# ------------------------------- JAX glue ----------------------------------

def im2col_T(x_cmajor, kh, kw):
    """(C, B, H, W) -> (C*kh*kw, B*Ho*Wo).  Rows ordered (c, kh, kw) to match the
    PyTorch Conv2d weight flatten; columns ordered (b, i, j).  Pure layout plumbing."""
    C, B, H, W = x_cmajor.shape
    Ho, Wo = H - kh + 1, W - kw + 1
    shifts = [x_cmajor[:, :, di:di + Ho, dj:dj + Wo]
              for di in range(kh) for dj in range(kw)]           # each (C, B, Ho, Wo)
    p = jnp.stack(shifts, axis=1)                                # (C, kh*kw, B, Ho, Wo)
    return p.reshape(C * kh * kw, B * Ho * Wo), Ho, Wo


def pool_window_slabs(x_cmajor):
    """(C, B, H, W) -> four (C, B, H//2, W//2) slabs, one per 2x2-window corner."""
    C, B, H, W = x_cmajor.shape
    Ho, Wo = H // 2, W // 2
    return [x_cmajor[:, :, a:a + 2 * Ho:2, b:b + 2 * Wo:2]
            for a in (0, 1) for b in (0, 1)]


def affine_grid_coords(theta, H, W):
    """F.affine_grid + grid_sample un-normalisation (align_corners=False)."""
    xs = (2.0 * jnp.arange(W, dtype=jnp.float32) + 1.0) / W - 1.0
    ys = (2.0 * jnp.arange(H, dtype=jnp.float32) + 1.0) / H - 1.0
    xn = jnp.broadcast_to(xs[None, :], (H, W))[None]             # (1, H, W)
    yn = jnp.broadcast_to(ys[:, None], (H, W))[None]
    t = theta[:, :, :, None, None]                               # (B, 2, 3, 1, 1)
    gx = t[:, 0, 0] * xn + t[:, 0, 1] * yn + t[:, 0, 2]
    gy = t[:, 1, 0] * xn + t[:, 1, 1] * yn + t[:, 1, 2]
    ix = ((gx + 1.0) * W - 1.0) * 0.5
    iy = ((gy + 1.0) * H - 1.0) * 0.5
    B = theta.shape[0]
    return ix.reshape(B, 1, H * W), iy.reshape(B, 1, H * W)


def init_params(key, obs_size=28, n_actions=4, fc1_units=200, fc2_units=100):
    ks = jax.random.split(key, 12)

    def uni(k, shape, fan_in):
        bound = 1.0 / float(fan_in) ** 0.5
        return jax.random.uniform(k, shape, jnp.float32, -bound, bound)

    p = {}
    conv1_w = uni(ks[0], (8, 1, 7, 7), 1 * 7 * 7)
    p["conv1_w"] = conv1_w.reshape(8, 49)                        # channel-major matmul form
    p["conv1_b"] = uni(ks[1], (8,), 49).reshape(8, 1)
    conv2_w = uni(ks[2], (10, 8, 5, 5), 8 * 5 * 5)
    p["conv2_w"] = conv2_w.reshape(10, 200)
    p["conv2_b"] = uni(ks[3], (10,), 200).reshape(10, 1)
    p["loc1_wt"] = uni(ks[4], (32, 90), 90).T                    # (90, 32)
    p["loc1_b"] = uni(ks[5], (32,), 90).reshape(1, 32)
    # fc_loc[2]: zeroed weight + identity-transform bias, exactly like __init__
    p["loc2_wt"] = jnp.zeros((32, 6), jnp.float32)
    p["loc2_b"] = jnp.array([[1, 0, 0, 0, 1, 0]], jnp.float32)
    p["fc1_wt"] = uni(ks[6], (fc1_units, obs_size), obs_size).T
    p["fc1_b"] = uni(ks[7], (fc1_units,), obs_size).reshape(1, fc1_units)
    p["fc2_wt"] = uni(ks[8], (fc2_units, fc1_units), fc1_units).T
    p["fc2_b"] = uni(ks[9], (fc2_units,), fc1_units).reshape(1, fc2_units)
    p["fc3_wt"] = uni(ks[10], (n_actions, fc2_units), fc2_units).T
    p["fc3_b"] = uni(ks[11], (n_actions,), fc2_units).reshape(1, n_actions)
    return p


@jax.jit
def qnetwork_forward(params, x):
    """x: (B, 1, 28, 28) NCHW  ->  (B, 1, 28, n_actions)."""
    B, C, H, W = x.shape                                         # C must be 1 (STN conv1)

    # ---- STN localization (channel-major / lane-dense throughout) ----
    xc = x.transpose(1, 0, 2, 3)                                 # (1, B, 28, 28)
    p1, H1, W1 = im2col_T(xc, 7, 7)                              # (49, B*484)
    c1 = conv_mm(p1, params["conv1_w"], params["conv1_b"])       # (8, B*484)
    c1 = c1.reshape(8, B, H1, W1)                                # (8, B, 22, 22)

    slabs1 = pool_window_slabs(c1)                               # 4 x (8, B, 11, 11)
    patch_slabs = [im2col_T(s, 5, 5)[0] for s in slabs1]         # 4 x (200, B*49)
    c2 = pool_relu_conv_mm(patch_slabs, params["conv2_w"], params["conv2_b"])
    H2 = W2 = 7
    c2 = c2.reshape(10, B, H2, W2)                               # (10, B, 7, 7)

    slabs2 = pool_window_slabs(c2)                               # 4 x (10, B, 3, 3)
    flat2 = [s.transpose(1, 0, 2, 3).reshape(B, 90) for s in slabs2]   # torch view order
    theta = pool_relu_loc(flat2, params["loc1_wt"], params["loc1_b"],
                          params["loc2_wt"], params["loc2_b"])   # (B, 6)
    theta = theta.reshape(B, 2, 3)

    # ---- affine_grid + grid_sample (bilinear, zeros padding) ----
    ix, iy = affine_grid_coords(theta, H, W)
    sampled = grid_sample_pallas(x.reshape(B, H, W), ix, iy, H, W)
    xt = sampled.reshape(B, C, H, W)

    # ---- Q head: nn.Linear acts on the last axis of the NCHW tensor ----
    h0 = xt.reshape(B * C * H, W)
    out = qhead(h0, params["fc1_wt"], params["fc1_b"],
                params["fc2_wt"], params["fc2_b"],
                params["fc3_wt"], params["fc3_b"])               # (B*C*H, n_actions)
    return out.reshape(B, C, H, -1)


if __name__ == "__main__":
    key = jax.random.PRNGKey(0)
    k_x, k_p = jax.random.split(key)
    B, n_actions = 2, 4
    x = jax.random.normal(k_x, (B, 1, 28, 28), jnp.float32)
    params = init_params(k_p, obs_size=28, n_actions=n_actions)

    out = qnetwork_forward(params, x)
    out = jax.block_until_ready(out)
    assert out.shape == (B, 1, 28, n_actions), out.shape
    assert bool(jnp.all(jnp.isfinite(out)))
    print("KERNEL_OK")
</pallas_src>

<mosaic_0001>
module attributes {stable_mosaic.version = 11 : i64} {
  func.func @_conv_mm_kernel(%arg0: i32, %arg1: memref<49x968xf32, #tpu.memory_space<vmem>>, %arg2: memref<8x49xf32, #tpu.memory_space<vmem>>, %arg3: memref<8x1xf32, #tpu.memory_space<vmem>>, %arg4: memref<8x968xf32, #tpu.memory_space<vmem>>) attributes {dimension_semantics = [#tpu.dimension_semantics<arbitrary>], iteration_bounds = array<i64: 1>, scalar_prefetch = 0 : i64, scratch_operands = 0 : i64, tpu.core_type = #tpu.core_type<tc>, window_params = [{pipeline_mode = #tpu.pipeline_mode<synchronous>, transform_indices = @transform_0, window_bounds = array<i64: 49, 968>}, {pipeline_mode = #tpu.pipeline_mode<synchronous>, transform_indices = @transform_1, window_bounds = array<i64: 8, 49>}, {pipeline_mode = #tpu.pipeline_mode<synchronous>, transform_indices = @transform_2, window_bounds = array<i64: 8, 1>}, {pipeline_mode = #tpu.pipeline_mode<synchronous>, transform_indices = @transform_3, window_bounds = array<i64: 8, 968>}]} {
    %c0 = arith.constant 0 : index
    %c0_0 = arith.constant 0 : index
    %0 = vector.load %arg2[%c0, %c0_0] : memref<8x49xf32, #tpu.memory_space<vmem>>, vector<8x49xf32>
    %c0_1 = arith.constant 0 : index
    %c0_2 = arith.constant 0 : index
    %1 = vector.load %arg1[%c0_1, %c0_2] : memref<49x968xf32, #tpu.memory_space<vmem>>, vector<49x968xf32>
    %cst = arith.constant dense<0.000000e+00> : vector<8x968xf32>
    %2 = tpu.matmul %0, %1, %cst {dimension_numbers = #tpu.dot_dimension_numbers<[1], [0], [0], [1], [0, 0, 1, 1], [], []>} : vector<8x49xf32>, vector<49x968xf32>, vector<8x968xf32> -> vector<8x968xf32>
    %c0_3 = arith.constant 0 : index
    %c0_4 = arith.constant 0 : index
    %3 = vector.load %arg3[%c0_3, %c0_4] : memref<8x1xf32, #tpu.memory_space<vmem>>, vector<8x1xf32>
    %4 = vector.broadcast %3 : vector<8x1xf32> to vector<8x968xf32>
    %5 = arith.addf %2, %4 : vector<8x968xf32>
    %c0_5 = arith.constant 0 : index
    %c0_6 = arith.constant 0 : index
    %6 = vector.load %arg4[%c0_5, %c0_6] : memref<8x968xf32, #tpu.memory_space<vmem>>, vector<8x968xf32>
    tpu.vector_store %arg4[%c0_5, %c0_6], %5 {strides = array<i32>} : memref<8x968xf32, #tpu.memory_space<vmem>>, vector<8x968xf32>,
    return
  }
  func.func @transform_0(%arg0: i32) -> (i32, i32) {
    %c0_i32 = arith.constant 0 : i32
    %c0_i32_0 = arith.constant 0 : i32
    %c0_i32_1 = arith.constant 0 : i32
    return %c0_i32, %c0_i32_0 : i32, i32
  }
  func.func @transform_1(%arg0: i32) -> (i32, i32) {
    %c0_i32 = arith.constant 0 : i32
    %c0_i32_0 = arith.constant 0 : i32
    %c0_i32_1 = arith.constant 0 : i32
    return %c0_i32, %c0_i32_0 : i32, i32
  }
  func.func @transform_2(%arg0: i32) -> (i32, i32) {
    %c0_i32 = arith.constant 0 : i32
    %c0_i32_0 = arith.constant 0 : i32
    %c0_i32_1 = arith.constant 0 : i32
    return %c0_i32, %c0_i32_0 : i32, i32
  }
  func.func @transform_3(%arg0: i32) -> (i32, i32) {
    %c0_i32 = arith.constant 0 : i32
    %c0_i32_0 = arith.constant 0 : i32
    %c0_i32_1 = arith.constant 0 : i32
    return %c0_i32, %c0_i32_0 : i32, i32
  }
}

module attributes {stable_mosaic.version = 11 : i64} {
  func.func @_pool_relu_conv_kernel(%arg0: i32, %arg1: memref<200x98xf32, #tpu.memory_space<vmem>>, %arg2: memref<200x98xf32, #tpu.memory_space<vmem>>, %arg3: memref<200x98xf32, #tpu.memory_space<vmem>>, %arg4: memref<200x98xf32, #tpu.memory_space<vmem>>, %arg5: memref<10x200xf32, #tpu.memory_space<vmem>>, %arg6: memref<10x1xf32, #tpu.memory_space<vmem>>, %arg7: memref<10x98xf32, #tpu.memory_space<vmem>>) attributes {dimension_semantics = [#tpu.dimension_semantics<arbitrary>], iteration_bounds = array<i64: 1>, scalar_prefetch = 0 : i64, scratch_operands = 0 : i64, tpu.core_type = #tpu.core_type<tc>, window_params = [{pipeline_mode = #tpu.pipeline_mode<synchronous>, transform_indices = @transform_0, window_bounds = array<i64: 200, 98>}, {pipeline_mode = #tpu.pipeline_mode<synchronous>, transform_indices = @transform_1, window_bounds = array<i64: 200, 98>}, {pipeline_mode = #tpu.pipeline_mode<synchronous>, transform_indices = @transform_2, window_bounds = array<i64: 200, 98>}, {pipeline_mode = #tpu.pipeline_mode<synchronous>, transform_indices = @transform_3, window_bounds = array<i64: 200, 98>}, {pipeline_mode = #tpu.pipeline_mode<synchronous>, transform_indices = @transform_4, window_bounds = array<i64: 10, 200>}, {pipeline_mode = #tpu.pipeline_mode<synchronous>, transform_indices = @transform_5, window_bounds = array<i64: 10, 1>}, {pipeline_mode = #tpu.pipeline_mode<synchronous>, transform_indices = @transform_6, window_bounds = array<i64: 10, 98>}]} {
    %c0 = arith.constant 0 : index
    %c0_0 = arith.constant 0 : index
    %0 = vector.load %arg1[%c0, %c0_0] : memref<200x98xf32, #tpu.memory_space<vmem>>, vector<200x98xf32>
    %c0_1 = arith.constant 0 : index
    %c0_2 = arith.constant 0 : index
    %1 = vector.load %arg2[%c0_1, %c0_2] : memref<200x98xf32, #tpu.memory_space<vmem>>, vector<200x98xf32>
    %2 = arith.maximumf %0, %1 : vector<200x98xf32>
    %c0_3 = arith.constant 0 : index
    %c0_4 = arith.constant 0 : index
    %3 = vector.load %arg3[%c0_3, %c0_4] : memref<200x98xf32, #tpu.memory_space<vmem>>, vector<200x98xf32>
    %c0_5 = arith.constant 0 : index
    %c0_6 = arith.constant 0 : index
    %4 = vector.load %arg4[%c0_5, %c0_6] : memref<200x98xf32, #tpu.memory_space<vmem>>, vector<200x98xf32>
    %5 = arith.maximumf %3, %4 : vector<200x98xf32>
    %6 = arith.maximumf %2, %5 : vector<200x98xf32>
    %cst = arith.constant 0.000000e+00 : f32
    %7 = vector.broadcast %cst : f32 to vector<200x98xf32>
    %8 = arith.maximumf %6, %7 : vector<200x98xf32>
    %c0_7 = arith.constant 0 : index
    %c0_8 = arith.constant 0 : index
    %9 = vector.load %arg5[%c0_7, %c0_8] : memref<10x200xf32, #tpu.memory_space<vmem>>, vector<10x200xf32>
    %cst_9 = arith.constant dense<0.000000e+00> : vector<10x98xf32>
    %10 = tpu.matmul %9, %8, %cst_9 {dimension_numbers = #tpu.dot_dimension_numbers<[1], [0], [0], [1], [0, 0, 1, 1], [], []>} : vector<10x200xf32>, vector<200x98xf32>, vector<10x98xf32> -> vector<10x98xf32>
    %c0_10 = arith.constant 0 : index
    %c0_11 = arith.constant 0 : index
    %11 = vector.load %arg6[%c0_10, %c0_11] : memref<10x1xf32, #tpu.memory_space<vmem>>, vector<10x1xf32>
    %12 = vector.broadcast %11 : vector<10x1xf32> to vector<10x98xf32>
    %13 = arith.addf %10, %12 : vector<10x98xf32>
    %c0_12 = arith.constant 0 : index
    %c0_13 = arith.constant 0 : index
    %14 = vector.load %arg7[%c0_12, %c0_13] : memref<10x98xf32, #tpu.memory_space<vmem>>, vector<10x98xf32>
    tpu.vector_store %arg7[%c0_12, %c0_13], %13 {strides = array<i32>} : memref<10x98xf32, #tpu.memory_space<vmem>>, vector<10x98xf32>,
    return
  }
  func.func @transform_0(%arg0: i32) -> (i32, i32) {
    %c0_i32 = arith.constant 0 : i32
    %c0_i32_0 = arith.constant 0 : i32
    %c0_i32_1 = arith.constant 0 : i32
    return %c0_i32, %c0_i32_0 : i32, i32
  }
  func.func @transform_1(%arg0: i32) -> (i32, i32) {
    %c0_i32 = arith.constant 0 : i32
    %c0_i32_0 = arith.constant 0 : i32
    %c0_i32_1 = arith.constant 0 : i32
    return %c0_i32, %c0_i32_0 : i32, i32
  }
  func.func @transform_2(%arg0: i32) -> (i32, i32) {
    %c0_i32 = arith.constant 0 : i32
    %c0_i32_0 = arith.constant 0 : i32
    %c0_i32_1 = arith.constant 0 : i32
    return %c0_i32, %c0_i32_0 : i32, i32
  }
  func.func @transform_3(%arg0: i32) -> (i32, i32) {
    %c0_i32 = arith.constant 0 : i32
    %c0_i32_0 = arith.constant 0 : i32
    %c0_i32_1 = arith.constant 0 : i32
    return %c0_i32, %c0_i32_0 : i32, i32
  }
  func.func @transform_4(%arg0: i32) -> (i32, i32) {
    %c0_i32 = arith.constant 0 : i32
    %c0_i32_0 = arith.constant 0 : i32
    %c0_i32_1 = arith.constant 0 : i32
    return %c0_i32, %c0_i32_0 : i32, i32
  }
  func.func @transform_5(%arg0: i32) -> (i32, i32) {
    %c0_i32 = arith.constant 0 : i32
    %c0_i32_0 = arith.constant 0 : i32
    %c0_i32_1 = arith.constant 0 : i32
    return %c0_i32, %c0_i32_0 : i32, i32
  }
  func.func @transform_6(%arg0: i32) -> (i32, i32) {
    %c0_i32 = arith.constant 0 : i32
    %c0_i32_0 = arith.constant 0 : i32
    %c0_i32_1 = arith.constant 0 : i32
    return %c0_i32, %c0_i32_0 : i32, i32
  }
}

module attributes {stable_mosaic.version = 11 : i64} {
  func.func @_pool_relu_loc_kernel(%arg0: i32, %arg1: memref<2x90xf32, #tpu.memory_space<vmem>>, %arg2: memref<2x90xf32, #tpu.memory_space<vmem>>, %arg3: memref<2x90xf32, #tpu.memory_space<vmem>>, %arg4: memref<2x90xf32, #tpu.memory_space<vmem>>, %arg5: memref<90x32xf32, #tpu.memory_space<vmem>>, %arg6: memref<1x32xf32, #tpu.memory_space<vmem>>, %arg7: memref<32x6xf32, #tpu.memory_space<vmem>>, %arg8: memref<1x6xf32, #tpu.memory_space<vmem>>, %arg9: memref<2x6xf32, #tpu.memory_space<vmem>>) attributes {dimension_semantics = [#tpu.dimension_semantics<arbitrary>], iteration_bounds = array<i64: 1>, scalar_prefetch = 0 : i64, scratch_operands = 0 : i64, tpu.core_type = #tpu.core_type<tc>, window_params = [{pipeline_mode = #tpu.pipeline_mode<synchronous>, transform_indices = @transform_0, window_bounds = array<i64: 2, 90>}, {pipeline_mode = #tpu.pipeline_mode<synchronous>, transform_indices = @transform_1, window_bounds = array<i64: 2, 90>}, {pipeline_mode = #tpu.pipeline_mode<synchronous>, transform_indices = @transform_2, window_bounds = array<i64: 2, 90>}, {pipeline_mode = #tpu.pipeline_mode<synchronous>, transform_indices = @transform_3, window_bounds = array<i64: 2, 90>}, {pipeline_mode = #tpu.pipeline_mode<synchronous>, transform_indices = @transform_4, window_bounds = array<i64: 90, 32>}, {pipeline_mode = #tpu.pipeline_mode<synchronous>, transform_indices = @transform_5, window_bounds = array<i64: 1, 32>}, {pipeline_mode = #tpu.pipeline_mode<synchronous>, transform_indices = @transform_6, window_bounds = array<i64: 32, 6>}, {pipeline_mode = #tpu.pipeline_mode<synchronous>, transform_indices = @transform_7, window_bounds = array<i64: 1, 6>}, {pipeline_mode = #tpu.pipeline_mode<synchronous>, transform_indices = @transform_8, window_bounds = array<i64: 2, 6>}]} {
    %c0 = arith.constant 0 : index
    %c0_0 = arith.constant 0 : index
    %0 = vector.load %arg1[%c0, %c0_0] : memref<2x90xf32, #tpu.memory_space<vmem>>, vector<2x90xf32>
    %c0_1 = arith.constant 0 : index
    %c0_2 = arith.constant 0 : index
    %1 = vector.load %arg2[%c0_1, %c0_2] : memref<2x90xf32, #tpu.memory_space<vmem>>, vector<2x90xf32>
    %2 = arith.maximumf %0, %1 : vector<2x90xf32>
    %c0_3 = arith.constant 0 : index
    %c0_4 = arith.constant 0 : index
    %3 = vector.load %arg3[%c0_3, %c0_4] : memref<2x90xf32, #tpu.memory_space<vmem>>, vector<2x90xf32>
    %c0_5 = arith.constant 0 : index
    %c0_6 = arith.constant 0 : index
    %4 = vector.load %arg4[%c0_5, %c0_6] : memref<2x90xf32, #tpu.memory_space<vmem>>, vector<2x90xf32>
    %5 = arith.maximumf %3, %4 : vector<2x90xf32>
    %6 = arith.maximumf %2, %5 : vector<2x90xf32>
    %cst = arith.constant 0.000000e+00 : f32
    %7 = vector.broadcast %cst : f32 to vector<2x90xf32>
    %8 = arith.maximumf %6, %7 : vector<2x90xf32>
    %c0_7 = arith.constant 0 : index
    %c0_8 = arith.constant 0 : index
    %9 = vector.load %arg5[%c0_7, %c0_8] : memref<90x32xf32, #tpu.memory_space<vmem>>, vector<90x32xf32>
    %cst_9 = arith.constant dense<0.000000e+00> : vector<2x32xf32>
    %10 = tpu.matmul %8, %9, %cst_9 {dimension_numbers = #tpu.dot_dimension_numbers<[1], [0], [0], [1], [0, 0, 1, 1], [], []>} : vector<2x90xf32>, vector<90x32xf32>, vector<2x32xf32> -> vector<2x32xf32>
    %c0_10 = arith.constant 0 : index
    %c0_11 = arith.constant 0 : index
    %11 = vector.load %arg6[%c0_10, %c0_11] : memref<1x32xf32, #tpu.memory_space<vmem>>, vector<1x32xf32>
    %12 = vector.broadcast %11 : vector<1x32xf32> to vector<2x32xf32>
    %13 = arith.addf %10, %12 : vector<2x32xf32>
    %cst_12 = arith.constant 0.000000e+00 : f32
    %14 = vector.broadcast %cst_12 : f32 to vector<2x32xf32>
    %15 = arith.maximumf %13, %14 : vector<2x32xf32>
    %c0_13 = arith.constant 0 : index
    %c0_14 = arith.constant 0 : index
    %16 = vector.load %arg7[%c0_13, %c0_14] : memref<32x6xf32, #tpu.memory_space<vmem>>, vector<32x6xf32>
    %cst_15 = arith.constant dense<0.000000e+00> : vector<2x6xf32>
    %17 = tpu.matmul %15, %16, %cst_15 {dimension_numbers = #tpu.dot_dimension_numbers<[1], [0], [0], [1], [0, 0, 1, 1], [], []>} : vector<2x32xf32>, vector<32x6xf32>, vector<2x6xf32> -> vector<2x6xf32>
    %c0_16 = arith.constant 0 : index
    %c0_17 = arith.constant 0 : index
    %18 = vector.load %arg8[%c0_16, %c0_17] : memref<1x6xf32, #tpu.memory_space<vmem>>, vector<1x6xf32>
    %19 = vector.broadcast %18 : vector<1x6xf32> to vector<2x6xf32>
    %20 = arith.addf %17, %19 : vector<2x6xf32>
    %c0_18 = arith.constant 0 : index
    %c0_19 = arith.constant 0 : index
    %21 = vector.load %arg9[%c0_18, %c0_19] : memref<2x6xf32, #tpu.memory_space<vmem>>, vector<2x6xf32>
    tpu.vector_store %arg9[%c0_18, %c0_19], %20 {strides = array<i32>} : memref<2x6xf32, #tpu.memory_space<vmem>>, vector<2x6xf32>,
    return
  }
  func.func @transform_0(%arg0: i32) -> (i32, i32) {
    %c0_i32 = arith.constant 0 : i32
    %c0_i32_0 = arith.constant 0 : i32
    %c0_i32_1 = arith.constant 0 : i32
    return %c0_i32, %c0_i32_0 : i32, i32
  }
  func.func @transform_1(%arg0: i32) -> (i32, i32) {
    %c0_i32 = arith.constant 0 : i32
    %c0_i32_0 = arith.constant 0 : i32
    %c0_i32_1 = arith.constant 0 : i32
    return %c0_i32, %c0_i32_0 : i32, i32
  }
  func.func @transform_2(%arg0: i32) -> (i32, i32) {
    %c0_i32 = arith.constant 0 : i32
    %c0_i32_0 = arith.constant 0 : i32
    %c0_i32_1 = arith.constant 0 : i32
    return %c0_i32, %c0_i32_0 : i32, i32
  }
  func.func @transform_3(%arg0: i32) -> (i32, i32) {
    %c0_i32 = arith.constant 0 : i32
    %c0_i32_0 = arith.constant 0 : i32
    %c0_i32_1 = arith.constant 0 : i32
    return %c0_i32, %c0_i32_0 : i32, i32
  }
  func.func @transform_4(%arg0: i32) -> (i32, i32) {
    %c0_i32 = arith.constant 0 : i32
    %c0_i32_0 = arith.constant 0 : i32
    %c0_i32_1 = arith.constant 0 : i32
    return %c0_i32, %c0_i32_0 : i32, i32
  }
  func.func @transform_5(%arg0: i32) -> (i32, i32) {
    %c0_i32 = arith.constant 0 : i32
    %c0_i32_0 = arith.constant 0 : i32
    %c0_i32_1 = arith.constant 0 : i32
    return %c0_i32, %c0_i32_0 : i32, i32
  }
  func.func @transform_6(%arg0: i32) -> (i32, i32) {
    %c0_i32 = arith.constant 0 : i32
    %c0_i32_0 = arith.constant 0 : i32
    %c0_i32_1 = arith.constant 0 : i32
    return %c0_i32, %c0_i32_0 : i32, i32
  }
  func.func @transform_7(%arg0: i32) -> (i32, i32) {
    %c0_i32 = arith.constant 0 : i32
    %c0_i32_0 = arith.constant 0 : i32
    %c0_i32_1 = arith.constant 0 : i32
    return %c0_i32, %c0_i32_0 : i32, i32
  }
  func.func @transform_8(%arg0: i32) -> (i32, i32) {
    %c0_i32 = arith.constant 0 : i32
    %c0_i32_0 = arith.constant 0 : i32
    %c0_i32_1 = arith.constant 0 : i32
    return %c0_i32, %c0_i32_0 : i32, i32
  }
}

module attributes {stable_mosaic.version = 11 : i64} {
  func.func @_grid_sample_kernel(%arg0: i32, %arg1: memref<1x28x28xf32, #tpu.memory_space<vmem>>, %arg2: memref<1x1x784xf32, #tpu.memory_space<vmem>>, %arg3: memref<1x1x784xf32, #tpu.memory_space<vmem>>, %arg4: memref<1x1x784xf32, #tpu.memory_space<vmem>>) attributes {dimension_semantics = [#tpu.dimension_semantics<parallel>], iteration_bounds = array<i64: 2>, scalar_prefetch = 0 : i64, scratch_operands = 0 : i64, tpu.core_type = #tpu.core_type<tc>, window_params = [{transform_indices = @transform_0, window_bounds = array<i64: 1, 28, 28>}, {transform_indices = @transform_1, window_bounds = array<i64: 1, 1, 784>}, {transform_indices = @transform_2, window_bounds = array<i64: 1, 1, 784>}, {transform_indices = @transform_3, window_bounds = array<i64: 1, 1, 784>}]} {
    %c0 = arith.constant 0 : index
    %c0_0 = arith.constant 0 : index
    %c0_1 = arith.constant 0 : index
    %0 = vector.load %arg1[%c0, %c0_0, %c0_1] : memref<1x28x28xf32, #tpu.memory_space<vmem>>, vector<1x28x28xf32>
    %1 = vector.shape_cast %0 : vector<1x28x28xf32> to vector<28x28xf32>
    %c0_2 = arith.constant 0 : index
    %c0_3 = arith.constant 0 : index
    %c0_4 = arith.constant 0 : index
    %2 = vector.load %arg2[%c0_2, %c0_3, %c0_4] : memref<1x1x784xf32, #tpu.memory_space<vmem>>, vector<1x1x784xf32>
    %3 = vector.shape_cast %2 : vector<1x1x784xf32> to vector<1x784xf32>
    %c0_5 = arith.constant 0 : index
    %c0_6 = arith.constant 0 : index
    %c0_7 = arith.constant 0 : index
    %4 = vector.load %arg3[%c0_5, %c0_6, %c0_7] : memref<1x1x784xf32, #tpu.memory_space<vmem>>, vector<1x1x784xf32>
    %5 = vector.shape_cast %4 : vector<1x1x784xf32> to vector<1x784xf32>
    %6 = math.floor %3 : vector<1x784xf32>
    %7 = math.floor %5 : vector<1x784xf32>
    %8 = arith.subf %3, %6 : vector<1x784xf32>
    %9 = arith.subf %5, %7 : vector<1x784xf32>
    %10 = arith.fptosi %6 : vector<1x784xf32> to vector<1x784xi32>
    %11 = arith.fptosi %7 : vector<1x784xf32> to vector<1x784xi32>
    %12 = tpu.iota {dimensions = array<i32: 0>} : vector<28x784xi32>
    %13 = vector.broadcast %10 : vector<1x784xi32> to vector<28x784xi32>
    %14 = arith.cmpi eq, %12, %13 : vector<28x784xi32>
    %cst = arith.constant 1.000000e+00 : f32
    %15 = vector.broadcast %cst : f32 to vector<1x784xf32>
    %16 = arith.subf %15, %8 : vector<1x784xf32>
    %cst_8 = arith.constant 0.000000e+00 : f32
    %17 = vector.shape_cast %16 : vector<1x784xf32> to vector<1x784xf32>
    %18 = vector.broadcast %17 : vector<1x784xf32> to vector<28x784xf32>
    %19 = vector.broadcast %cst_8 : f32 to vector<28x784xf32>
    %20 = arith.select %14, %18, %19 : vector<28x784xi1>, vector<28x784xf32>
    %c1_i32 = arith.constant 1 : i32
    %21 = vector.broadcast %c1_i32 : i32 to vector<1x784xi32>
    %22 = arith.addi %10, %21 : vector<1x784xi32>
    %23 = vector.broadcast %22 : vector<1x784xi32> to vector<28x784xi32>
    %24 = arith.cmpi eq, %12, %23 : vector<28x784xi32>
    %cst_9 = arith.constant 0.000000e+00 : f32
    %25 = vector.shape_cast %8 : vector<1x784xf32> to vector<1x784xf32>
    %26 = vector.broadcast %25 : vector<1x784xf32> to vector<28x784xf32>
    %27 = vector.broadcast %cst_9 : f32 to vector<28x784xf32>
    %28 = arith.select %24, %26, %27 : vector<28x784xi1>, vector<28x784xf32>
    %29 = arith.addf %20, %28 : vector<28x784xf32>
    %30 = tpu.iota {dimensions = array<i32: 0>} : vector<28x784xi32>
    %31 = vector.broadcast %11 : vector<1x784xi32> to vector<28x784xi32>
    %32 = arith.cmpi eq, %30, %31 : vector<28x784xi32>
    %cst_10 = arith.constant 1.000000e+00 : f32
    %33 = vector.broadcast %cst_10 : f32 to vector<1x784xf32>
    %34 = arith.subf %33, %9 : vector<1x784xf32>
    %cst_11 = arith.constant 0.000000e+00 : f32
    %35 = vector.shape_cast %34 : vector<1x784xf32> to vector<1x784xf32>
    %36 = vector.broadcast %35 : vector<1x784xf32> to vector<28x784xf32>
    %37 = vector.broadcast %cst_11 : f32 to vector<28x784xf32>
    %38 = arith.select %32, %36, %37 : vector<28x784xi1>, vector<28x784xf32>
    %c1_i32_12 = arith.constant 1 : i32
    %39 = vector.broadcast %c1_i32_12 : i32 to vector<1x784xi32>
    %40 = arith.addi %11, %39 : vector<1x784xi32>
    %41 = vector.broadcast %40 : vector<1x784xi32> to vector<28x784xi32>
    %42 = arith.cmpi eq, %30, %41 : vector<28x784xi32>
    %cst_13 = arith.constant 0.000000e+00 : f32
    %43 = vector.shape_cast %9 : vector<1x784xf32> to vector<1x784xf32>
    %44 = vector.broadcast %43 : vector<1x784xf32> to vector<28x784xf32>
    %45 = vector.broadcast %cst_13 : f32 to vector<28x784xf32>
    %46 = arith.select %42, %44, %45 : vector<28x784xi1>, vector<28x784xf32>
    %47 = arith.addf %38, %46 : vector<28x784xf32>
    %cst_14 = arith.constant dense<0.000000e+00> : vector<28x784xf32>
    %48 = tpu.matmul %1, %29, %cst_14 {dimension_numbers = #tpu.dot_dimension_numbers<[1], [0], [0], [1], [0, 0, 1, 1], [], []>} : vector<28x28xf32>, vector<28x784xf32>, vector<28x784xf32> -> vector<28x784xf32>
    %49 = arith.mulf %47, %48 : vector<28x784xf32>
    %cst_15 = arith.constant dense<0.000000e+00> : vector<784xf32>
    %50 = vector.multi_reduction <add>, %49, %cst_15 [0] : vector<28x784xf32> to vector<784xf32>
    %51 = vector.shape_cast %50 : vector<784xf32> to vector<1x784xf32>
    %c0_16 = arith.constant 0 : index
    %c0_17 = arith.constant 0 : index
    %c0_18 = arith.constant 0 : index
    %52 = vector.load %arg4[%c0_16, %c0_17, %c0_18] : memref<1x1x784xf32, #tpu.memory_space<vmem>>, vector<1x1x784xf32>
    %53 = vector.shape_cast %52 : vector<1x1x784xf32> to vector<1x784xf32>
    %54 = vector.shape_cast %51 : vector<1x784xf32> to vector<1x1x784xf32>
    tpu.vector_store %arg4[%c0_16, %c0_17, %c0_18], %54 {strides = array<i32>} : memref<1x1x784xf32, #tpu.memory_space<vmem>>, vector<1x1x784xf32>,
    return
  }
  func.func @transform_0(%arg0: i32) -> (i32, i32, i32) {
    %c0_i32 = arith.constant 0 : i32
    %c0_i32_0 = arith.constant 0 : i32
    %c0_i32_1 = arith.constant 0 : i32
    return %arg0, %c0_i32, %c0_i32_0 : i32, i32, i32
  }
  func.func @transform_1(%arg0: i32) -> (i32, i32, i32) {
    %c0_i32 = arith.constant 0 : i32
    %c0_i32_0 = arith.constant 0 : i32
    %c0_i32_1 = arith.constant 0 : i32
    return %arg0, %c0_i32, %c0_i32_0 : i32, i32, i32
  }
  func.func @transform_2(%arg0: i32) -> (i32, i32, i32) {
    %c0_i32 = arith.constant 0 : i32
    %c0_i32_0 = arith.constant 0 : i32
    %c0_i32_1 = arith.constant 0 : i32
    return %arg0, %c0_i32, %c0_i32_0 : i32, i32, i32
  }
  func.func @transform_3(%arg0: i32) -> (i32, i32, i32) {
    %c0_i32 = arith.constant 0 : i32
    %c0_i32_0 = arith.constant 0 : i32
    %c0_i32_1 = arith.constant 0 : i32
    return %arg0, %c0_i32, %c0_i32_0 : i32, i32, i32
  }
}

module attributes {stable_mosaic.version = 11 : i64} {
  func.func @_qhead_kernel(%arg0: i32, %arg1: memref<56x28xf32, #tpu.memory_space<vmem>>, %arg2: memref<28x200xf32, #tpu.memory_space<vmem>>, %arg3: memref<1x200xf32, #tpu.memory_space<vmem>>, %arg4: memref<200x100xf32, #tpu.memory_space<vmem>>, %arg5: memref<1x100xf32, #tpu.memory_space<vmem>>, %arg6: memref<100x4xf32, #tpu.memory_space<vmem>>, %arg7: memref<1x4xf32, #tpu.memory_space<vmem>>, %arg8: memref<56x4xf32, #tpu.memory_space<vmem>>) attributes {dimension_semantics = [#tpu.dimension_semantics<parallel>], iteration_bounds = array<i64: 1>, scalar_prefetch = 0 : i64, scratch_operands = 0 : i64, tpu.core_type = #tpu.core_type<tc>, window_params = [{transform_indices = @transform_0, window_bounds = array<i64: 56, 28>}, {pipeline_mode = #tpu.pipeline_mode<synchronous>, transform_indices = @transform_1, window_bounds = array<i64: 28, 200>}, {pipeline_mode = #tpu.pipeline_mode<synchronous>, transform_indices = @transform_2, window_bounds = array<i64: 1, 200>}, {pipeline_mode = #tpu.pipeline_mode<synchronous>, transform_indices = @transform_3, window_bounds = array<i64: 200, 100>}, {pipeline_mode = #tpu.pipeline_mode<synchronous>, transform_indices = @transform_4, window_bounds = array<i64: 1, 100>}, {pipeline_mode = #tpu.pipeline_mode<synchronous>, transform_indices = @transform_5, window_bounds = array<i64: 100, 4>}, {pipeline_mode = #tpu.pipeline_mode<synchronous>, transform_indices = @transform_6, window_bounds = array<i64: 1, 4>}, {transform_indices = @transform_7, window_bounds = array<i64: 56, 4>}]} {
    %c0 = arith.constant 0 : index
    %c0_0 = arith.constant 0 : index
    %0 = vector.load %arg1[%c0, %c0_0] : memref<56x28xf32, #tpu.memory_space<vmem>>, vector<56x28xf32>
    %c0_1 = arith.constant 0 : index
    %c0_2 = arith.constant 0 : index
    %1 = vector.load %arg2[%c0_1, %c0_2] : memref<28x200xf32, #tpu.memory_space<vmem>>, vector<28x200xf32>
    %cst = arith.constant dense<0.000000e+00> : vector<56x200xf32>
    %2 = tpu.matmul %0, %1, %cst {dimension_numbers = #tpu.dot_dimension_numbers<[1], [0], [0], [1], [0, 0, 1, 1], [], []>} : vector<56x28xf32>, vector<28x200xf32>, vector<56x200xf32> -> vector<56x200xf32>
    %c0_3 = arith.constant 0 : index
    %c0_4 = arith.constant 0 : index
    %3 = vector.load %arg3[%c0_3, %c0_4] : memref<1x200xf32, #tpu.memory_space<vmem>>, vector<1x200xf32>
    %4 = vector.broadcast %3 : vector<1x200xf32> to vector<56x200xf32>
    %5 = arith.addf %2, %4 : vector<56x200xf32>
    %cst_5 = arith.constant 0.000000e+00 : f32
    %6 = vector.broadcast %cst_5 : f32 to vector<56x200xf32>
    %7 = arith.maximumf %5, %6 : vector<56x200xf32>
    %c0_6 = arith.constant 0 : index
    %c0_7 = arith.constant 0 : index
    %8 = vector.load %arg4[%c0_6, %c0_7] : memref<200x100xf32, #tpu.memory_space<vmem>>, vector<200x100xf32>
    %cst_8 = arith.constant dense<0.000000e+00> : vector<56x100xf32>
    %9 = tpu.matmul %7, %8, %cst_8 {dimension_numbers = #tpu.dot_dimension_numbers<[1], [0], [0], [1], [0, 0, 1, 1], [], []>} : vector<56x200xf32>, vector<200x100xf32>, vector<56x100xf32> -> vector<56x100xf32>
    %c0_9 = arith.constant 0 : index
    %c0_10 = arith.constant 0 : index
    %10 = vector.load %arg5[%c0_9, %c0_10] : memref<1x100xf32, #tpu.memory_space<vmem>>, vector<1x100xf32>
    %11 = vector.broadcast %10 : vector<1x100xf32> to vector<56x100xf32>
    %12 = arith.addf %9, %11 : vector<56x100xf32>
    %cst_11 = arith.constant 0.000000e+00 : f32
    %13 = vector.broadcast %cst_11 : f32 to vector<56x100xf32>
    %14 = arith.maximumf %12, %13 : vector<56x100xf32>
    %c0_12 = arith.constant 0 : index
    %c0_13 = arith.constant 0 : index
    %15 = vector.load %arg6[%c0_12, %c0_13] : memref<100x4xf32, #tpu.memory_space<vmem>>, vector<100x4xf32>
    %cst_14 = arith.constant dense<0.000000e+00> : vector<56x4xf32>
    %16 = tpu.matmul %14, %15, %cst_14 {dimension_numbers = #tpu.dot_dimension_numbers<[1], [0], [0], [1], [0, 0, 1, 1], [], []>} : vector<56x100xf32>, vector<100x4xf32>, vector<56x4xf32> -> vector<56x4xf32>
    %c0_15 = arith.constant 0 : index
    %c0_16 = arith.constant 0 : index
    %17 = vector.load %arg7[%c0_15, %c0_16] : memref<1x4xf32, #tpu.memory_space<vmem>>, vector<1x4xf32>
    %18 = vector.broadcast %17 : vector<1x4xf32> to vector<56x4xf32>
    %19 = arith.addf %16, %18 : vector<56x4xf32>
    %c0_17 = arith.constant 0 : index
    %c0_18 = arith.constant 0 : index
    %20 = vector.load %arg8[%c0_17, %c0_18] : memref<56x4xf32, #tpu.memory_space<vmem>>, vector<56x4xf32>
    tpu.vector_store %arg8[%c0_17, %c0_18], %19 {strides = array<i32>} : memref<56x4xf32, #tpu.memory_space<vmem>>, vector<56x4xf32>,
    return
  }
  func.func @transform_0(%arg0: i32) -> (i32, i32) {
    %c0_i32 = arith.constant 0 : i32
    %c0_i32_0 = arith.constant 0 : i32
    return %arg0, %c0_i32 : i32, i32
  }
  func.func @transform_1(%arg0: i32) -> (i32, i32) {
    %c0_i32 = arith.constant 0 : i32
    %c0_i32_0 = arith.constant 0 : i32
    %c0_i32_1 = arith.constant 0 : i32
    return %c0_i32, %c0_i32_0 : i32, i32
  }
  func.func @transform_2(%arg0: i32) -> (i32, i32) {
    %c0_i32 = arith.constant 0 : i32
    %c0_i32_0 = arith.constant 0 : i32
    %c0_i32_1 = arith.constant 0 : i32
    return %c0_i32, %c0_i32_0 : i32, i32
  }
  func.func @transform_3(%arg0: i32) -> (i32, i32) {
    %c0_i32 = arith.constant 0 : i32
    %c0_i32_0 = arith.constant 0 : i32
    %c0_i32_1 = arith.constant 0 : i32
    return %c0_i32, %c0_i32_0 : i32, i32
  }
  func.func @transform_4(%arg0: i32) -> (i32, i32) {
    %c0_i32 = arith.constant 0 : i32
    %c0_i32_0 = arith.constant 0 : i32
    %c0_i32_1 = arith.constant 0 : i32
    return %c0_i32, %c0_i32_0 : i32, i32
  }
  func.func @transform_5(%arg0: i32) -> (i32, i32) {
    %c0_i32 = arith.constant 0 : i32
    %c0_i32_0 = arith.constant 0 : i32
    %c0_i32_1 = arith.constant 0 : i32
    return %c0_i32, %c0_i32_0 : i32, i32
  }
  func.func @transform_6(%arg0: i32) -> (i32, i32) {
    %c0_i32 = arith.constant 0 : i32
    %c0_i32_0 = arith.constant 0 : i32
    %c0_i32_1 = arith.constant 0 : i32
    return %c0_i32, %c0_i32_0 : i32, i32
  }
  func.func @transform_7(%arg0: i32) -> (i32, i32) {
    %c0_i32 = arith.constant 0 : i32
    %c0_i32_0 = arith.constant 0 : i32
    return %arg0, %c0_i32 : i32, i32
  }
}

</mosaic_0001>

<bundles_post_ra>
// kernel: qnetwork_forward.5
= control target key start
LH: loop header
LB: loop body
LE: loop exit
PB: predicated region body
PF: predicated region fallthrough
CT: control target
= control target key end

     0   :  { %v466_v3 = vmov 0.0   ;;  %v467_v8 = vmov 0   ;;  %vm81_vm0 = vcmask 1040384   ;;  %vm77_vm1 = vcmask 400384   ;;  %s702_s0 = inlined_call_operand.vmem [shape: f32[49,968], index: 0, kind: input, shape index: {}]   ;;  %s703_s1 = inlined_call_operand.vmem [shape: f32[8,49], index: 1, kind: input, shape index: {}]   ;;  %s704_s2 = inlined_call_operand.vmem [shape: f32[8,1], index: 2, kind: input, shape index: {}]   ;;  %s705_s3 = inlined_call_operand.vmem [shape: f32[8,968], index: 3, kind: output, shape index: {}]  }
   0x1   :  { %v16_v0 = vld [vmem:[%s702_s0 + $0x8] sm:$0xff]  ;;  %v18_v2 = vld [vmem:[%s702_s0 + $0x18] sm:$0xff]  ;;  %170 = vmatprep.mubr.f32.mxu0 %v466_v3  ;;  %241 = vmatprep.mubr.f32.mxu1 %v466_v3  ;;  %v15_v6 = vld [vmem:[%s702_s0] sm:$0xff]  ;;  %vm397_vm2 = vcmask 588800  }
   0x2   :  { %v24_v1 = vld [vmem:[%s702_s0 + $0x48] sm:$0xff]  ;;  %v26_v5 = vld [vmem:[%s702_s0 + $0x58] sm:$0xff]  ;;  %v23_v7 = vld [vmem:[%s702_s0 + $0x40] sm:$0xff]  ;;  %465 = vset.pattern.permute.xlu0 %v467_v8 }
   0x3   :  { %v415_v4 = vpack.c.bf16 %v24_v1, %v16_v0  ;;  %v427_v9 = vpack.c.bf16 %v26_v5, %v18_v2  ;;  %v417_v10 = vpack.c.bf16 %v23_v7, %v15_v6  ;;  %v17_v11 = vld [vmem:[%s702_s0 + $0x10] sm:$0xff]  ;;  %v32_v13 = vld [vmem:[%s702_s0 + $0x88] sm:$0xff]  ;;  %v34_v16 = vld [vmem:[%s702_s0 + $0x98] sm:$0xff] }
   0x4   :  { %v25_v12 = vld [vmem:[%s702_s0 + $0x50] sm:$0xff]  ;;  %v40_v15 = vld [vmem:[%s702_s0 + $0xc8] sm:$0xff]  ;;  %v42_v17 = vld [vmem:[%s702_s0 + $0xd8] sm:$0xff] }
   0x5   :  { %416 = vmatprep.subr.bf16.mxu0 %v415_v4  ;;  %v429_v14 = vpack.c.bf16 %v25_v12, %v17_v11  ;;  %428 = vmatprep.subr.bf16.mxu1 %v427_v9  ;;  %v419_v18 = vpack.c.bf16 %v40_v15, %v32_v13  ;;  %v431_v19 = vpack.c.bf16 %v42_v17, %v34_v16  ;;  %v31_v20 = vld [vmem:[%s702_s0 + $0x80] sm:$0xff]  ;;  %v33_v22 = vld [vmem:[%s702_s0 + $0x90] sm:$0xff]  ;;  %v48_v25 = vld [vmem:[%s702_s0 + $0x108] sm:$0xff] }
   0x6   :  { %418 = vmatpush1.bf16.msra.mxu0 %v417_v10  ;;  %v39_v21 = vld [vmem:[%s702_s0 + $0xc0] sm:$0xff]  ;;  %v41_v24 = vld [vmem:[%s702_s0 + $0xd0] sm:$0xff]  ;;  %v56_v26 = vld [vmem:[%s702_s0 + $0x148] sm:$0xff] }
   0x7   :  { %430 = vmatpush1.bf16.msra.mxu1 %v429_v14  ;;  %v421_v23 = vpack.c.bf16 %v39_v21, %v31_v20  ;;  %420 = vmatprep.subr.bf16.mxu0 %v419_v18  ;;  %v433_v27 = vpack.c.bf16 %v41_v24, %v33_v22  ;;  %v423_v28 = vpack.c.bf16 %v56_v26, %v48_v25  ;;  %v50_v29 = vld [vmem:[%s702_s0 + $0x118] sm:$0xff]  ;;  %v47_v31 = vld [vmem:[%s702_s0 + $0x100] sm:$0xff]  ;;  %v49_v34 = vld [vmem:[%s702_s0 + $0x110] sm:$0xff] }
   0x8   :  { %432 = vmatprep.subr.bf16.mxu1 %v431_v19  ;;  %v58_v30 = vld [vmem:[%s702_s0 + $0x158] sm:$0xff]  ;;  %v55_v33 = vld [vmem:[%s702_s0 + $0x140] sm:$0xff]  ;;  %v57_v35 = vld [vmem:[%s702_s0 + $0x150] sm:$0xff] }
   0x9   :  { %v435_v32 = vpack.c.bf16 %v58_v30, %v50_v29  ;;  %v425_v36 = vpack.c.bf16 %v55_v33, %v47_v31  ;;  %v437_v37 = vpack.c.bf16 %v57_v35, %v49_v34  ;;  %v64_v38 = vld [vmem:[%s702_s0 + $0x188] sm:$0x1]  ;;  %v66_v39 = vld [vmem:[%s702_s0 + $0x198] sm:$0x1]  ;;  %v63_v41 = vld [vmem:[%s702_s0 + $0x180] sm:$0x1] }
   0xa   :  { %422 = vmatpush1.bf16.msra.mxu0 %v421_v23  ;;  %v20_v40 = vld [vmem:[%s702_s0 + $0x28] sm:$0xff]  ;;  %v22_v43 = vld [vmem:[%s702_s0 + $0x38] sm:$0xff]  ;;  %v65_v45 = vld [vmem:[%s702_s0 + $0x190] sm:$0x1] }
   0xb   :  { %434 = vmatpush1.bf16.msra.mxu1 %v433_v27  ;;  %424 = vmatprep.subr.bf16.mxu0 %v423_v28  ;;  %v28_v42 = vld [vmem:[%s702_s0 + $0x68] sm:$0xff]  ;;  %v30_v44 = vld [vmem:[%s702_s0 + $0x78] sm:$0xff]  ;;  %v19_v46 = vld [vmem:[%s702_s0 + $0x20] sm:$0xff] }
   0xc   :  { %436 = vmatprep.subr.bf16.mxu1 %v435_v32  ;;  %v27_v47 = vld [vmem:[%s702_s0 + $0x60] sm:$0xff]  ;;  %v21_v48 = vld [vmem:[%s702_s0 + $0x30] sm:$0xff]  ;;  %v36_v50 = vld [vmem:[%s702_s0 + $0xa8] sm:$0xff]  ;;  %v439_v53 = vpack.c.bf16 %v28_v42, %v20_v40  ;;  %v451_v56 = vpack.c.bf16 %v30_v44, %v22_v43 }
   0xd   :  { %v29_v49 = vld [vmem:[%s702_s0 + $0x70] sm:$0xff]  ;;  %v44_v51 = vld [vmem:[%s702_s0 + $0xe8] sm:$0xff]  ;;  %v14_v52 = vld [vmem:[%s703_s1] sm:$0xff]  ;;  %v441_v57 = vpack.c.bf16 %v27_v47, %v19_v46 }
   0xe   :  { %426 = vmatpush1.bf16.msra.mxu0 %v425_v36  ;;  %v38_v54 = vld [vmem:[%s702_s0 + $0xb8] sm:$0xff]  ;;  %v453_v58 = vpack.c.bf16 %v29_v49, %v21_v48  ;;  %v443_v59 = vpack.c.bf16 %v44_v51, %v36_v50  ;;  %v35_v60 = vld [vmem:[%s702_s0 + $0xa0] sm:$0xff]  ;;  %v37_v62 = vld [vmem:[%s702_s0 + $0xb0] sm:$0xff] }
   0xf   :  { %438 = vmatpush1.bf16.msra.mxu1 %v437_v37  ;;  %403 = vmatprep.subr.msk.mxu0 %vm81_vm0, %v64_v38  ;;  %v46_v55 = vld [vmem:[%s702_s0 + $0xf8] sm:$0xff]  ;;  %v43_v61 = vld [vmem:[%s702_s0 + $0xe0] sm:$0xff]  ;;  %v45_v0 = vld [vmem:[%s702_s0 + $0xf0] sm:$0xff] }
  0x10   :  { %406 = vmatprep.subr.msk.mxu1 %vm81_vm0, %v66_v39  ;;  %v455_v63 = vpack.c.bf16 %v46_v55, %v38_v54  ;;  %v52_v1 = vld [vmem:[%s702_s0 + $0x128] sm:$0xff]  ;;  %v54_v4 = vld [vmem:[%s702_s0 + $0x138] sm:$0xff]  ;;  %v445_v6 = vpack.c.bf16 %v43_v61, %v35_v60  ;;  %v71_v7 = vld [vmem:[%s704_s2] sm:$0xff]  ;;  %v457_v8 = vpack.c.bf16 %v45_v0, %v37_v62 }
  0x11   :  { %v60_v2 = vld [vmem:[%s702_s0 + $0x168] sm:$0xff]  ;;  %v62_v5 = vld [vmem:[%s702_s0 + $0x178] sm:$0xff]  ;;  %v51_v10 = vld [vmem:[%s702_s0 + $0x120] sm:$0xff]  ;;  %74 = vperm.xlu0 %465, %v71_v7  }
  0x12   :  { %404 = vmatpush1.msk.msra.mxu0 %vm81_vm0, %v63_v41  ;;  %v447_v9 = vpack.c.bf16 %v60_v2, %v52_v1  ;;  %v59_v11 = vld [vmem:[%s702_s0 + $0x160] sm:$0xff]  ;;  %v459_v12 = vpack.c.bf16 %v62_v5, %v54_v4  ;;  %v53_v13 = vld [vmem:[%s702_s0 + $0x130] sm:$0xff]  ;;  %v68_v17 = vld [vmem:[%s702_s0 + $0x1a8] sm:$0x1] }
  0x13   :  { %407 = vmatpush1.msk.msra.mxu1 %vm81_vm0, %v65_v45  ;;  %405 = vmatmul.mubr.msk.f32.vlgmr.msra.gmra.mrb[0].mxu0 %vm77_vm1, %v14_v52  ;;  %v61_v14 = vld [vmem:[%s702_s0 + $0x170] sm:$0xff]  ;;  %v449_v15 = vpack.c.bf16 %v59_v11, %v51_v10  ;;  %v70_v18 = vld [vmem:[%s702_s0 + $0x1b8] sm:$0x1] }
  0x14   :  { %408 = vmatmul.mubr.msk.f32.vlgmr.msra.gmra.mrb[0].mxu1 %vm77_vm1, %v14_v52  ;;  %440 = vmatprep.subr.bf16.mxu0 %v439_v53  ;;  %v461_v16 = vpack.c.bf16 %v61_v14, %v53_v13  ;;  %v69_v19 = vld [vmem:[%s702_s0 + $0x1b0] sm:$0x1] }
  0x15   :  { %452 = vmatprep.subr.bf16.mxu1 %v451_v56  ;;  %442 = vmatpush1.bf16.msra.mxu0 %v441_v57 }
  0x16   :  { %454 = vmatpush1.bf16.msra.mxu1 %v453_v58  ;;  %444 = vmatprep.subr.bf16.mxu0 %v443_v59 }
  0x17   :  { %456 = vmatprep.subr.bf16.mxu1 %v455_v63  ;;  %312 = vmatprep.mubr.f32.mxu0 %v466_v3 }
  0x18   :  { %383 = vmatprep.mubr.f32.mxu1 %v466_v3  ;;  %v67_v3 = vld [vmem:[%s702_s0 + $0x1a0] sm:$0x1] }
  0x19   :  { %446 = vmatpush1.bf16.msra.mxu0 %v445_v6 }
  0x1a   :  { %458 = vmatpush1.bf16.msra.mxu1 %v457_v8  ;;  %448 = vmatprep.subr.bf16.mxu0 %v447_v9 }
  0x1b   :  { %460 = vmatprep.subr.bf16.mxu1 %v459_v12 }
  0x1d   :  { %450 = vmatpush1.bf16.msra.mxu0 %v449_v15 }
  0x1e   :  { %462 = vmatpush1.bf16.msra.mxu1 %v461_v16  ;;  %409 = vmatprep.subr.msk.mxu0 %vm81_vm0, %v68_v17 }
  0x1f   :  { %412 = vmatprep.subr.msk.mxu1 %vm81_vm0, %v70_v18 }
  0x21   :  { %410 = vmatpush1.msk.msra.mxu0 %vm81_vm0, %v67_v3 }
  0x22   :  { %413 = vmatpush1.msk.msra.mxu1 %vm81_vm0, %v69_v19  ;;  %411 = vmatmul.mubr.msk.f32.vlgmr.msra.gmra.mrb[2].mxu0 %vm77_vm1, %v14_v52 }
  0x23   :  { %414 = vmatmul.mubr.msk.f32.vlgmr.msra.gmra.mrb[2].mxu1 %vm77_vm1, %v14_v52 }
  0x90   :  { %v75_v20 = vpop.permute.xlu0 %74 }
  0xe6   :  { %v172_v21 = vpop.f32.mrb[0].mxu0 }
  0xe7   :  { %v243_v22 = vpop.f32.mrb[0].mxu1  ;;  %v173_v23 = vadd.f32 %v172_v21, %v75_v20  ;;  %v174_v24 = vpop.f32.mrb[1].mxu0 }
  0xe8   :  { %v244_v25 = vadd.f32 %v243_v22, %v75_v20  ;;  %v175_v26 = vadd.f32 %v174_v24, %v75_v20  ;;  %v245_v27 = vpop.f32.mrb[1].mxu1 }
  0xe9   :  { %390 = vst [vmem:[%s705_s3] sm:$0xff] %v173_v23  ;;  %v246_v28 = vadd.f32 %v245_v27, %v75_v20 }
  0xea   :  { %392 = vst [vmem:[%s705_s3 + $0x10] sm:$0xff] %v244_v25  ;;  %391 = vst [vmem:[%s705_s3 + $0x8] sm:$0xff] %v175_v26 }
  0xeb   :  { %393 = vst [vmem:[%s705_s3 + $0x18] sm:$0xff] %v246_v28 }
  0xf5   :  { %v314_v29 = vpop.f32.mrb[2].mxu0 }
  0xf6   :  { %v315_v30 = vadd.f32 %v314_v29, %v75_v20  ;;  %v385_v31 = vpop.f32.mrb[2].mxu1  ;;  %v316_v32 = vpop.f32.mrb[3].mxu0 }
  0xf7   :  { %v386_v33 = vadd.f32 %v385_v31, %v75_v20  ;;  %v317_v34 = vadd.f32 %v316_v32, %v75_v20  ;;  %v387_v35 = vpop.f32.mrb[3].mxu1 }
  0xf8   :  { %394 = vst [vmem:[%s705_s3 + $0x20] sm:$0xff] %v315_v30  ;;  %v388_v36 = vadd.f32 %v387_v35, %v75_v20 }
  0xf9   :  { %396 = vst [vmem:[%s705_s3 + $0x30] sm:$0xff] %v386_v33  ;;  %395 = vst [vmem:[%s705_s3 + $0x28] sm:$0xff] %v317_v34 }
  0xfa   :  { %398 = vst.msk [vmem:[%s705_s3 + $0x38] sm:$0xff] %vm397_vm2, %v388_v36 }

// kernel: qnetwork_forward.6
= control target key start
LH: loop header
LB: loop body
LE: loop exit
PB: predicated region body
PF: predicated region fallthrough
CT: control target
= control target key end

     0   :  { %v397_v0 = vmov 0.0|0.0   ;;  %v398_v8 = vmov 0   ;;  %vm239_vm0 = vcmask 588800   ;;  %vm321_vm1 = vcmask 801792   ;;  %s785_s0 = inlined_call_operand.vmem [shape: f32[200,98], index: 0, kind: input, shape index: {}]   ;;  %s786_s1 = inlined_call_operand.vmem [shape: f32[200,98], index: 1, kind: input, shape index: {}]   ;;  %s787_s2 = inlined_call_operand.vmem [shape: f32[200,98], index: 2, kind: input, shape index: {}]   ;;  %s788_s3 = inlined_call_operand.vmem [shape: f32[200,98], index: 3, kind: input, shape index: {}]   ;;  %s789_s4 = inlined_call_operand.vmem [shape: f32[10,200], index: 4, kind: input, shape index: {}]   ;;  %s790_s5 = inlined_call_operand.vmem [shape: f32[10,1], index: 5, kind: input, shape index: {}]   ;;  %s791_s6 = inlined_call_operand.vmem [shape: f32[10,98], index: 6, kind: output, shape index: {}]  }
   0x1   :  { %331 = vmatprep.subr.bf16.mxu0 %v397_v0  ;;  %367 = vmatprep.subr.bf16.mxu1 %v397_v0  ;;  %v23_v1 = vld [vmem:[%s785_s0] sm:$0xff]  ;;  %v24_v2 = vld [vmem:[%s785_s0 + $0x8] sm:$0xff]  ;;  %v25_v12 = vld [vmem:[%s785_s0 + $0x10] sm:$0xff]  ;;  %vm323_vm2 = vcmask 795648  }
   0x2   :  { %v48_v3 = vld [vmem:[%s786_s1] sm:$0xff]  ;;  %v49_v4 = vld [vmem:[%s786_s1 + $0x8] sm:$0xff]  ;;  %396 = vset.pattern.permute.xlu0 %v398_v8  ;;  %v26_v15 = vld [vmem:[%s785_s0 + $0x18] sm:$0xff] }
   0x3   :  { %v73_v5 = vmax.f32 %v23_v1, %v48_v3  ;;  %v98_v6 = vld [vmem:[%s787_s2] sm:$0xff]  ;;  %v99_v7 = vld [vmem:[%s787_s2 + $0x8] sm:$0xff]  ;;  %v74_v9 = vmax.f32 %v24_v2, %v49_v4  ;;  %v50_v16 = vld [vmem:[%s786_s1 + $0x10] sm:$0xff] }
   0x4   :  { %v123_v10 = vld [vmem:[%s788_s3] sm:$0xff]  ;;  %v124_v11 = vld [vmem:[%s788_s3 + $0x8] sm:$0xff]  ;;  %v51_v17 = vld [vmem:[%s786_s1 + $0x18] sm:$0xff]  ;;  %v75_v18 = vmax.f32 %v25_v12, %v50_v16 }
   0x5   :  { %v148_v13 = vmax.f32 %v98_v6, %v123_v10  ;;  %v149_v14 = vmax.f32 %v99_v7, %v124_v11  ;;  %v76_v19 = vmax.f32 %v26_v15, %v51_v17  ;;  %v100_v20 = vld [vmem:[%s787_s2 + $0x10] sm:$0xff]  ;;  %v101_v21 = vld [vmem:[%s787_s2 + $0x18] sm:$0xff]  ;;  %v27_v27 = vld [vmem:[%s785_s0 + $0x20] sm:$0xff] }
   0x6   :  { %v125_v22 = vld [vmem:[%s788_s3 + $0x10] sm:$0xff]  ;;  %v126_v25 = vld [vmem:[%s788_s3 + $0x18] sm:$0xff]  ;;  %v28_v28 = vld [vmem:[%s785_s0 + $0x28] sm:$0xff] }
   0x7   :  { %v173_v23 = vmax.f32 %v73_v5, %v148_v13  ;;  %v174_v24 = vmax.f32 %v74_v9, %v149_v14  ;;  %v150_v26 = vmax.f32 %v100_v20, %v125_v22  ;;  %v151_v29 = vmax.f32 %v101_v21, %v126_v25  ;;  %v52_v30 = vld [vmem:[%s786_s1 + $0x20] sm:$0xff]  ;;  %v53_v31 = vld [vmem:[%s786_s1 + $0x28] sm:$0xff]  ;;  %v29_v44 = vld [vmem:[%s785_s0 + $0x30] sm:$0xff] }
   0x8   :  { %v102_v32 = vld [vmem:[%s787_s2 + $0x20] sm:$0xff]  ;;  %v77_v36 = vmax.f32 %v27_v27, %v52_v30  ;;  %v103_v37 = vld [vmem:[%s787_s2 + $0x28] sm:$0xff]  ;;  %v78_v41 = vmax.f32 %v28_v28, %v53_v31  ;;  %v30_v45 = vld [vmem:[%s785_s0 + $0x38] sm:$0xff] }
   0x9   :  { %v198_v33 = vmax.f32 %v173_v23, 0.0  ;;  %v199_v34 = vmax.f32 %v174_v24, 0.0  ;;  %v175_v35 = vmax.f32 %v75_v18, %v150_v26  ;;  %v127_v38 = vld [vmem:[%s788_s3 + $0x20] sm:$0xff]  ;;  %v128_v39 = vld [vmem:[%s788_s3 + $0x28] sm:$0xff]  ;;  %v176_v40 = vmax.f32 %v76_v19, %v151_v29  ;;  %v54_v46 = vld [vmem:[%s786_s1 + $0x30] sm:$0xff] }
   0xa   :  { %v152_v42 = vmax.f32 %v102_v32, %v127_v38  ;;  %v153_v43 = vmax.f32 %v103_v37, %v128_v39  ;;  %v55_v49 = vld [vmem:[%s786_s1 + $0x38] sm:$0xff]  ;;  %v79_v50 = vmax.f32 %v29_v44, %v54_v46  ;;  %v104_v51 = vld [vmem:[%s787_s2 + $0x30] sm:$0xff]  ;;  %v31_v59 = vld [vmem:[%s785_s0 + $0x40] sm:$0xff] }
   0xb   :  { %v332_v47 = vpack.c.bf16 %v199_v34, %v198_v33  ;;  %v200_v48 = vmax.f32 %v175_v35, 0.0  ;;  %v105_v52 = vld [vmem:[%s787_s2 + $0x38] sm:$0xff]  ;;  %v201_v53 = vmax.f32 %v176_v40, 0.0  ;;  %v80_v56 = vmax.f32 %v30_v45, %v55_v49  ;;  %v129_v57 = vld [vmem:[%s788_s3 + $0x30] sm:$0xff]  ;;  %v32_v62 = vld [vmem:[%s785_s0 + $0x48] sm:$0xff] }
   0xc   :  { %v177_v54 = vmax.f32 %v77_v36, %v152_v42  ;;  %v178_v55 = vmax.f32 %v78_v41, %v153_v43  ;;  %v130_v58 = vld [vmem:[%s788_s3 + $0x38] sm:$0xff]  ;;  %v154_v60 = vmax.f32 %v104_v51, %v129_v57  ;;  %v56_v63 = vld [vmem:[%s786_s1 + $0x40] sm:$0xff]  ;;  %v57_v1 = vld [vmem:[%s786_s1 + $0x48] sm:$0xff] }
   0xd   :  { %333 = vmatpush1.bf16.msra.mxu0 %v332_v47  ;;  %380 = vmatpush1.bf16.msra.mxu1 %v332_v47  ;;  %v155_v61 = vmax.f32 %v105_v52, %v130_v58  ;;  %v335_v2 = vpack.c.bf16 %v201_v53, %v200_v48  ;;  %v81_v5 = vmax.f32 %v31_v59, %v56_v63  ;;  %v106_v6 = vld [vmem:[%s787_s2 + $0x40] sm:$0xff]  ;;  %v107_v7 = vld [vmem:[%s787_s2 + $0x48] sm:$0xff]  ;;  %v33_v14 = vld [vmem:[%s785_s0 + $0x50] sm:$0xff] }
   0xe   :  { %334 = vmatprep.subr.bf16.mxu0 %v397_v0  ;;  %368 = vmatprep.subr.bf16.mxu1 %v397_v0  ;;  %v202_v3 = vmax.f32 %v177_v54, 0.0  ;;  %v203_v4 = vmax.f32 %v178_v55, 0.0  ;;  %v131_v8 = vld [vmem:[%s788_s3 + $0x40] sm:$0xff]  ;;  %v179_v9 = vmax.f32 %v79_v50, %v154_v60  ;;  %v82_v11 = vmax.f32 %v32_v62, %v57_v1  ;;  %v132_v12 = vld [vmem:[%s788_s3 + $0x48] sm:$0xff]  ;;  %v34_v15 = vld [vmem:[%s785_s0 + $0x58] sm:$0xff] }
   0xf   :  { %v180_v10 = vmax.f32 %v80_v56, %v155_v61  ;;  %v156_v13 = vmax.f32 %v106_v6, %v131_v8  ;;  %v157_v17 = vmax.f32 %v107_v7, %v132_v12  ;;  %v58_v18 = vld [vmem:[%s786_s1 + $0x50] sm:$0xff]  ;;  %v59_v19 = vld [vmem:[%s786_s1 + $0x58] sm:$0xff]  ;;  %v35_v31 = vld [vmem:[%s785_s0 + $0x60] sm:$0xff] }
  0x10   :  { %v338_v16 = vpack.c.bf16 %v203_v4, %v202_v3  ;;  %v108_v20 = vld [vmem:[%s787_s2 + $0x50] sm:$0xff]  ;;  %v204_v21 = vmax.f32 %v179_v9, 0.0  ;;  %v83_v24 = vmax.f32 %v33_v14, %v58_v18  ;;  %v109_v25 = vld [vmem:[%s787_s2 + $0x58] sm:$0xff]  ;;  %v84_v29 = vmax.f32 %v34_v15, %v59_v19  ;;  %v36_v32 = vld [vmem:[%s785_s0 + $0x68] sm:$0xff] }
  0x11   :  { %336 = vmatpush1.bf16.msra.mxu0 %v335_v2  ;;  %381 = vmatpush1.bf16.msra.mxu1 %v335_v2  ;;  %v205_v22 = vmax.f32 %v180_v10, 0.0  ;;  %v181_v23 = vmax.f32 %v81_v5, %v156_v13  ;;  %v133_v26 = vld [vmem:[%s788_s3 + $0x50] sm:$0xff]  ;;  %v134_v27 = vld [vmem:[%s788_s3 + $0x58] sm:$0xff]  ;;  %v182_v28 = vmax.f32 %v82_v11, %v157_v17  ;;  %v60_v33 = vld [vmem:[%s786_s1 + $0x60] sm:$0xff] }
  0x12   :  { %337 = vmatprep.subr.bf16.mxu0 %v397_v0  ;;  %369 = vmatprep.subr.bf16.mxu1 %v397_v0  ;;  %v158_v30 = vmax.f32 %v108_v20, %v133_v26  ;;  %v159_v36 = vmax.f32 %v109_v25, %v134_v27  ;;  %v61_v37 = vld [vmem:[%s786_s1 + $0x68] sm:$0xff]  ;;  %v110_v38 = vld [vmem:[%s787_s2 + $0x60] sm:$0xff]  ;;  %v85_v42 = vmax.f32 %v35_v31, %v60_v33  ;;  %v37_v46 = vld [vmem:[%s785_s0 + $0x70] sm:$0xff] }
  0x13   :  { %v341_v34 = vpack.c.bf16 %v205_v22, %v204_v21  ;;  %v206_v35 = vmax.f32 %v181_v23, 0.0  ;;  %v111_v39 = vld [vmem:[%s787_s2 + $0x68] sm:$0xff]  ;;  %v207_v40 = vmax.f32 %v182_v28, 0.0  ;;  %v86_v43 = vmax.f32 %v36_v32, %v61_v37  ;;  %v135_v44 = vld [vmem:[%s788_s3 + $0x60] sm:$0xff]  ;;  %v38_v50 = vld [vmem:[%s785_s0 + $0x78] sm:$0xff] }
  0x14   :  { %v183_v41 = vmax.f32 %v83_v24, %v158_v30  ;;  %v136_v45 = vld [vmem:[%s788_s3 + $0x68] sm:$0xff]  ;;  %v184_v47 = vmax.f32 %v84_v29, %v159_v36  ;;  %v160_v48 = vmax.f32 %v110_v38, %v135_v44  ;;  %v62_v51 = vld [vmem:[%s786_s1 + $0x70] sm:$0xff]  ;;  %v63_v52 = vld [vmem:[%s786_s1 + $0x78] sm:$0xff] }
  0x15   :  { %339 = vmatpush1.bf16.msra.mxu0 %v338_v16  ;;  %382 = vmatpush1.bf16.msra.mxu1 %v338_v16  ;;  %v161_v49 = vmax.f32 %v111_v39, %v136_v45  ;;  %v112_v53 = vld [vmem:[%s787_s2 + $0x70] sm:$0xff]  ;;  %v113_v54 = vld [vmem:[%s787_s2 + $0x78] sm:$0xff]  ;;  %v344_v56 = vpack.c.bf16 %v207_v40, %v206_v35  ;;  %v39_v59 = vld [vmem:[%s785_s0 + $0x80] sm:$0xff]  ;;  %v87_v63 = vmax.f32 %v37_v46, %v62_v51 }
  0x16   :  { %340 = vmatprep.subr.bf16.mxu0 %v397_v0  ;;  %370 = vmatprep.subr.bf16.mxu1 %v397_v0  ;;  %v137_v55 = vld [vmem:[%s788_s3 + $0x70] sm:$0xff]  ;;  %v208_v57 = vmax.f32 %v183_v41, 0.0  ;;  %v138_v58 = vld [vmem:[%s788_s3 + $0x78] sm:$0xff]  ;;  %v40_v60 = vld [vmem:[%s785_s0 + $0x88] sm:$0xff]  ;;  %v209_v61 = vmax.f32 %v184_v47, 0.0  ;;  %v185_v62 = vmax.f32 %v85_v42, %v160_v48  ;;  %v88_v1 = vmax.f32 %v38_v50, %v63_v52 }
  0x17   :  { %v64_v2 = vld [vmem:[%s786_s1 + $0x80] sm:$0xff]  ;;  %v65_v3 = vld [vmem:[%s786_s1 + $0x88] sm:$0xff]  ;;  %v186_v5 = vmax.f32 %v86_v43, %v161_v49  ;;  %v162_v6 = vmax.f32 %v112_v53, %v137_v55  ;;  %v163_v7 = vmax.f32 %v113_v54, %v138_v58  ;;  %v41_v15 = vld [vmem:[%s785_s0 + $0x90] sm:$0xff] }
  0x18   :  { %v114_v4 = vld [vmem:[%s787_s2 + $0x80] sm:$0xff]  ;;  %v115_v8 = vld [vmem:[%s787_s2 + $0x88] sm:$0xff]  ;;  %v89_v11 = vmax.f32 %v39_v59, %v64_v2  ;;  %v90_v12 = vmax.f32 %v40_v60, %v65_v3  ;;  %v42_v16 = vld [vmem:[%s785_s0 + $0x98] sm:$0xff]  ;;  %v347_v17 = vpack.c.bf16 %v209_v61, %v208_v57  ;;  %v210_v21 = vmax.f32 %v185_v62, 0.0 }
  0x19   :  { %342 = vmatpush1.bf16.msra.mxu0 %v341_v34  ;;  %383 = vmatpush1.bf16.msra.mxu1 %v341_v34  ;;  %v139_v9 = vld [vmem:[%s788_s3 + $0x80] sm:$0xff]  ;;  %v140_v10 = vld [vmem:[%s788_s3 + $0x88] sm:$0xff]  ;;  %v66_v18 = vld [vmem:[%s786_s1 + $0x90] sm:$0xff]  ;;  %v211_v22 = vmax.f32 %v186_v5, 0.0  ;;  %v187_v23 = vmax.f32 %v87_v63, %v162_v6  ;;  %v188_v24 = vmax.f32 %v88_v1, %v163_v7 }
  0x1a   :  { %343 = vmatprep.subr.bf16.mxu0 %v397_v0  ;;  %371 = vmatprep.subr.bf16.mxu1 %v397_v0  ;;  %v164_v13 = vmax.f32 %v114_v4, %v139_v9  ;;  %v165_v14 = vmax.f32 %v115_v8, %v140_v10  ;;  %v116_v19 = vld [vmem:[%s787_s2 + $0x90] sm:$0xff]  ;;  %v67_v25 = vld [vmem:[%s786_s1 + $0x98] sm:$0xff]  ;;  %v91_v30 = vmax.f32 %v41_v15, %v66_v18  ;;  %v43_v34 = vld [vmem:[%s785_s0 + $0xa0] sm:$0xff] }
  0x1b   :  { %v141_v20 = vld [vmem:[%s788_s3 + $0x90] sm:$0xff]  ;;  %v117_v26 = vld [vmem:[%s787_s2 + $0x98] sm:$0xff]  ;;  %v92_v32 = vmax.f32 %v42_v16, %v67_v25  ;;  %v44_v35 = vld [vmem:[%s785_s0 + $0xa8] sm:$0xff]  ;;  %v350_v36 = vpack.c.bf16 %v211_v22, %v210_v21  ;;  %v212_v37 = vmax.f32 %v187_v23, 0.0  ;;  %v213_v38 = vmax.f32 %v188_v24, 0.0 }
  0x1c   :  { %v142_v27 = vld [vmem:[%s788_s3 + $0x98] sm:$0xff]  ;;  %v189_v28 = vmax.f32 %v89_v11, %v164_v13  ;;  %v190_v29 = vmax.f32 %v90_v12, %v165_v14  ;;  %v166_v31 = vmax.f32 %v116_v19, %v141_v20  ;;  %v68_v39 = vld [vmem:[%s786_s1 + $0xa0] sm:$0xff]  ;;  %v69_v42 = vld [vmem:[%s786_s1 + $0xa8] sm:$0xff] }
  0x1d   :  { %345 = vmatpush1.bf16.msra.mxu0 %v344_v56  ;;  %384 = vmatpush1.bf16.msra.mxu1 %v344_v56  ;;  %v167_v33 = vmax.f32 %v117_v26, %v142_v27  ;;  %v118_v40 = vld [vmem:[%s787_s2 + $0xa0] sm:$0xff]  ;;  %v119_v43 = vld [vmem:[%s787_s2 + $0xa8] sm:$0xff]  ;;  %v226_v49 = vld [vmem:[%s789_s4 + $0x18] sm:$0x3]  ;;  %v93_v51 = vmax.f32 %v43_v34, %v68_v39  ;;  %v353_v56 = vpack.c.bf16 %v213_v38, %v212_v37 }
  0x1e   :  { %346 = vmatprep.subr.bf16.mxu0 %v397_v0  ;;  %372 = vmatprep.subr.bf16.mxu1 %v397_v0  ;;  %v143_v41 = vld [vmem:[%s788_s3 + $0xa0] sm:$0xff]  ;;  %v144_v44 = vld [vmem:[%s788_s3 + $0xa8] sm:$0xff]  ;;  %v214_v45 = vmax.f32 %v189_v28, 0.0  ;;  %v215_v46 = vmax.f32 %v190_v29, 0.0  ;;  %v191_v47 = vmax.f32 %v91_v30, %v166_v31  ;;  %v45_v53 = vld [vmem:[%s785_s0 + $0xb0] sm:$0xff]  ;;  %v94_v57 = vmax.f32 %v44_v35, %v69_v42 }
  0x1f   :  { %v224_v48 = vld [vmem:[%s789_s4 + $0x8] sm:$0xff]  ;;  %v192_v50 = vmax.f32 %v92_v32, %v167_v33  ;;  %v168_v52 = vmax.f32 %v118_v40, %v143_v41  ;;  %v46_v54 = vld [vmem:[%s785_s0 + $0xb8] sm:$0xff]  ;;  %330 = vmatprep.mubr.msk.f32.mxu1 %vm239_vm0, %v226_v49  ;;  %v227_v55 = vld [vmem:[%s790_s5] sm:$0xff]  ;;  %v169_v58 = vmax.f32 %v119_v43, %v144_v44  ;;  %v399_v29 = vmov 0.0  }
  0x20   :  { %329 = vmatprep.mubr.msk.f32.mxu0 %vm239_vm0, %v224_v48  ;;  %v70_v59 = vld [vmem:[%s786_s1 + $0xb0] sm:$0xff]  ;;  %v71_v60 = vld [vmem:[%s786_s1 + $0xb8] sm:$0xff]  ;;  %v356_v2 = vpack.c.bf16 %v215_v46, %v214_v45  ;;  %v216_v3 = vmax.f32 %v191_v47, 0.0  ;;  %231 = vperm.xlu0 %396, %v227_v55   ;;  %v228_v8 = vld [vmem:[%s790_s5 + $0x8] sm:$0x3] }
  0x21   :  { %348 = vmatpush1.bf16.msra.mxu0 %v347_v17  ;;  %385 = vmatpush1.bf16.msra.mxu1 %v347_v17  ;;  %v120_v61 = vld [vmem:[%s787_s2 + $0xb0] sm:$0xff]  ;;  %v121_v62 = vld [vmem:[%s787_s2 + $0xb8] sm:$0xff]  ;;  %v217_v4 = vmax.f32 %v192_v50, 0.0  ;;  %v193_v5 = vmax.f32 %v93_v51, %v168_v52  ;;  %v95_v6 = vmax.f32 %v45_v53, %v70_v59  ;;  %v96_v7 = vmax.f32 %v46_v54, %v71_v60  ;;  %v47_v17 = vld [vmem:[%s785_s0 + $0xc0] sm:$0xff] }
  0x22   :  { %349 = vmatprep.subr.bf16.mxu0 %v397_v0  ;;  %373 = vmatprep.subr.bf16.mxu1 %v397_v0  ;;  %v145_v63 = vld [vmem:[%s788_s3 + $0xb0] sm:$0xff]  ;;  %v146_v1 = vld [vmem:[%s788_s3 + $0xb8] sm:$0xff]  ;;  %v194_v9 = vmax.f32 %v94_v57, %v169_v58  ;;  %v72_v18 = vld [vmem:[%s786_s1 + $0xc0] sm:$0xff] }
  0x23   :  { %v170_v10 = vmax.f32 %v120_v61, %v145_v63  ;;  %v171_v11 = vmax.f32 %v121_v62, %v146_v1  ;;  %v359_v12 = vpack.c.bf16 %v217_v4, %v216_v3  ;;  %v218_v13 = vmax.f32 %v193_v5, 0.0  ;;  %v122_v19 = vld [vmem:[%s787_s2 + $0xc0] sm:$0xff]  ;;  %v225_v31 = vld [vmem:[%s789_s4 + $0x10] sm:$0x3] }
  0x24   :  { %236 = vperm.xlu0 %396, %v228_v8   ;;  %v219_v14 = vmax.f32 %v194_v9, 0.0  ;;  %v147_v20 = vld [vmem:[%s788_s3 + $0xc0] sm:$0xff]  ;;  %v97_v21 = vmax.f32 %v47_v17, %v72_v18 }
  0x25   :  { %351 = vmatpush1.bf16.msra.mxu0 %v350_v36  ;;  %386 = vmatpush1.bf16.msra.mxu1 %v350_v36  ;;  %v195_v15 = vmax.f32 %v95_v6, %v170_v10  ;;  %v196_v16 = vmax.f32 %v96_v7, %v171_v11  ;;  %v172_v25 = vmax.f32 %v122_v19, %v147_v20  ;;  %v223_v30 = vld [vmem:[%s789_s4] sm:$0xff] }
  0x26   :  { %352 = vmatprep.subr.bf16.mxu0 %v397_v0  ;;  %374 = vmatprep.subr.bf16.mxu1 %v397_v0  ;;  %v362_v22 = vpack.c.bf16 %v219_v14, %v218_v13 }
  0x27   :  { %v220_v23 = vmax.f32 %v195_v15, 0.0  ;;  %v221_v24 = vmax.f32 %v196_v16, 0.0  ;;  %v197_v27 = vmax.f32 %v97_v21, %v172_v25 }
  0x29   :  { %354 = vmatpush1.bf16.msra.mxu0 %v353_v56  ;;  %387 = vmatpush1.bf16.msra.mxu1 %v353_v56  ;;  %v365_v26 = vpack.c.bf16 %v221_v24, %v220_v23  ;;  %v222_v28 = vmax.f32 %v197_v27, 0.0 }
  0x2a   :  { %355 = vmatprep.subr.bf16.mxu0 %v397_v0  ;;  %375 = vmatprep.subr.bf16.mxu1 %v397_v0 }
  0x2d   :  { %357 = vmatpush1.bf16.msra.mxu0 %v356_v2  ;;  %388 = vmatpush1.bf16.msra.mxu1 %v356_v2 }
  0x2e   :  { %358 = vmatprep.subr.bf16.mxu0 %v397_v0  ;;  %376 = vmatprep.subr.bf16.mxu1 %v397_v0 }
  0x31   :  { %360 = vmatpush1.bf16.msra.mxu0 %v359_v12  ;;  %389 = vmatpush1.bf16.msra.mxu1 %v359_v12 }
  0x32   :  { %361 = vmatprep.subr.bf16.mxu0 %v397_v0  ;;  %377 = vmatprep.subr.bf16.mxu1 %v397_v0 }
  0x35   :  { %363 = vmatpush1.bf16.msra.mxu0 %v362_v22  ;;  %390 = vmatpush1.bf16.msra.mxu1 %v362_v22 }
  0x36   :  { %364 = vmatprep.subr.bf16.mxu0 %v397_v0  ;;  %378 = vmatprep.subr.bf16.mxu1 %v397_v0 }
  0x39   :  { %366 = vmatpush1.bf16.msra.mxu0 %v365_v26  ;;  %391 = vmatpush1.bf16.msra.mxu1 %v365_v26 }
  0x3a   :  { %294 = vmatprep.subr.mxu0 %v399_v29  ;;  %379 = vmatprep.subr.mxu1 %v399_v29 }
  0x3d   :  { %295 = vmatpush1.msra.mxu0 %v222_v28  ;;  %392 = vmatpush1.msra.mxu1 %v222_v28 }
  0x3e   :  { %311 = vmatmul.mubr.f32.vlgmr.msra.gmra.mrb[0].mxu0 %v223_v30  ;;  %316 = vmatmul.mubr.f32.vlgmr.msra.gmra.mrb[0].mxu1 %v225_v31 }
  0x9f   :  { %v232_v32 = vpop.permute.xlu0 %231 }
  0xa3   :  { %v237_v0 = vpop.permute.xlu0 %236 }
 0x111   :  { %v312_v33 = vpop.f32.mrb[0].mxu0  ;;  %v317_v34 = vpop.f32.mrb[0].mxu1 }
 0x112   :  { %v313_v35 = vadd.f32 %v312_v33, %v232_v32  ;;  %v318_v36 = vadd.f32 %v317_v34, %v237_v0  ;;  %v314_v37 = vpop.f32.mrb[1].mxu0  ;;  %v319_v38 = vpop.f32.mrb[1].mxu1 }
 0x114   :  { %322 = vst.msk [vmem:[%s791_s6] sm:$0xff] %vm321_vm1, %v313_v35 }
 0x115   :  { %324 = vst.msk [vmem:[%s791_s6 + $0x8] sm:$0x3] %vm323_vm2, %v318_v36 }

// kernel: qnetwork_forward.7
= control target key start
LH: loop header
LB: loop body
LE: loop exit
PB: predicated region body
PF: predicated region fallthrough
CT: control target
= control target key end

     0   :  { %v316_v0 = vmov 0.0|0.0   ;;  %vm317_vm0 = vmmov 0   ;;  %v318_v6 = vmov 0.0   ;;  %vm60_vm1 = vcmask 1041408   ;;  %s434_s4 = inlined_call_operand.vmem [shape: f32[90,32], index: 4, kind: input, shape index: {}]   ;;  %s435_s6 = inlined_call_operand.vmem [shape: f32[32,6], index: 6, kind: input, shape index: {}]   ;;  %s436_s0 = inlined_call_operand.vmem [shape: f32[2,90], index: 0, kind: input, shape index: {}]   ;;  %s437_s1 = inlined_call_operand.vmem [shape: f32[2,90], index: 1, kind: input, shape index: {}]   ;;  %s438_s2 = inlined_call_operand.vmem [shape: f32[2,90], index: 2, kind: input, shape index: {}]   ;;  %s439_s3 = inlined_call_operand.vmem [shape: f32[2,90], index: 3, kind: input, shape index: {}]   ;;  %s440_s5 = inlined_call_operand.vmem [shape: f32[1,32], index: 5, kind: input, shape index: {}]   ;;  %s441_s7 = inlined_call_operand.vmem [shape: f32[1,6], index: 7, kind: input, shape index: {}]   ;;  %s442_s8 = inlined_call_operand.vmem [shape: f32[2,6], index: 8, kind: output, shape index: {}]  }
   0x1   :  { %287 = vmatprep.subr.bf16.mxu0 %v316_v0  ;;  %v37_v1 = vld [vmem:[%s434_s4] sm:$0xff]  ;;  %v38_v2 = vld [vmem:[%s434_s4 + $0x8] sm:$0xff]  ;;  %v39_v3 = vld [vmem:[%s434_s4 + $0x10] sm:$0xff]  ;;  %306 = vmatprep.subr.bf16.mxu1 %v316_v0  ;;  %vm319_vm2 = vmmov 1   ;;  %vm56_vm4 = vcmask 736256   ;;  %vm146_vm5 = vcmask 261120  }
   0x2   :  { %v288_v4 = vpack.c.bf16 %v38_v2, %v37_v1  ;;  %v40_v5 = vld [vmem:[%s434_s4 + $0x18] sm:$0xff]  ;;  %273 = vmatprep.mubr.msk.f32.mxu0 %vm317_vm0, %v318_v6  ;;  %284 = vmatprep.mubr.msk.f32.mxu1 %vm317_vm0, %v318_v6  ;;  %v41_v8 = vld [vmem:[%s434_s4 + $0x20] sm:$0xff]  ;;  %v42_v9 = vld [vmem:[%s434_s4 + $0x28] sm:$0xff]  ;;  %vm220_vm6 = vcmask 41984  }
   0x3   :  { %v291_v7 = vpack.c.bf16 %v40_v5, %v39_v3  ;;  %v135_v10 = vld [vmem:[%s435_s6] sm:$0xff]  ;;  %v136_v11 = vld [vmem:[%s435_s6 + $0x8] sm:$0xff]  ;;  %v294_v12 = vpack.c.bf16 %v42_v9, %v41_v8  ;;  %v43_v14 = vld [vmem:[%s434_s4 + $0x30] sm:$0xff] }
   0x4   :  { %289 = vmatpush3.bf16.msra.mxu0 %v288_v4  ;;  %v307_v13 = vpack.c.bf16 %v136_v11, %v135_v10  ;;  %v44_v15 = vld [vmem:[%s434_s4 + $0x38] sm:$0xff]  ;;  %v29_v16 = vld [vmem:[%s436_s0] sm:$0x3]  ;;  %v46_v22 = vld [vmem:[%s434_s4 + $0x48] sm:$0xff] }
   0x5   :  { %290 = vmatprep.subr.bf16.mxu0 %v316_v0  ;;  %v297_v17 = vpack.c.bf16 %v44_v15, %v43_v14  ;;  %v30_v18 = vld [vmem:[%s437_s1] sm:$0x3]  ;;  %v47_v26 = vld [vmem:[%s434_s4 + $0x50] sm:$0xff]  ;;  %v48_v27 = vld [vmem:[%s434_s4 + $0x58] sm:$0x3] }
   0x6   :  { %308 = vmatpush3.bf16.msra.mxu1 %v307_v13  ;;  %v32_v19 = vld [vmem:[%s438_s2] sm:$0x3]  ;;  %v31_v23 = vmax.f32 %v29_v16, %v30_v18  ;;  %v303_v29 = vpack.c.bf16 %v48_v27, %v47_v26  ;;  %vm304_vm3 = vmpackc.low %vm60_vm1, %vm319_vm2  ;;  %v137_v31 = vld [vmem:[%s435_s6 + $0x10] sm:$0xff] }
   0x7   :  { %309 = vmatprep.subr.bf16.mxu1 %v316_v0  ;;  %v33_v20 = vld [vmem:[%s439_s3] sm:$0x3]  ;;  %v138_v32 = vld [vmem:[%s435_s6 + $0x18] sm:$0xff] }
   0x8   :  { %292 = vmatpush3.bf16.msra.mxu0 %v291_v7  ;;  %v45_v21 = vld [vmem:[%s434_s4 + $0x40] sm:$0xff]  ;;  %v34_v24 = vmax.f32 %v32_v19, %v33_v20  ;;  %v310_v33 = vpack.c.bf16 %v138_v32, %v137_v31 }
   0x9   :  { %293 = vmatprep.subr.bf16.mxu0 %v316_v0  ;;  %v300_v25 = vpack.c.bf16 %v46_v22, %v45_v21  ;;  %v226_v34 = vld [vmem:[%s440_s5] ss:$0 sm:$0xff] }
   0xa   :  { %v35_v28 = vmax.f32 %v31_v23, %v34_v24  ;;  %311 = vmatpush3.bf16.msra.mxu1 %v310_v33  ;;  %v229_v39 = vld [vmem:[%s441_s7] ss:$0 sm:$0xff] }
   0xc   :  { %295 = vmatpush3.bf16.msra.mxu0 %v294_v12  ;;  %v36_v30 = vmax.f32 %v35_v28, 0.0 }
   0xd   :  { %296 = vmatprep.subr.bf16.mxu0 %v316_v0 }
  0x10   :  { %298 = vmatpush3.bf16.msra.mxu0 %v297_v17 }
  0x11   :  { %299 = vmatprep.subr.bf16.mxu0 %v316_v0 }
  0x14   :  { %301 = vmatpush3.bf16.msra.mxu0 %v300_v25 }
  0x15   :  { %302 = vmatprep.subr.bf16.mxu0 %v316_v0 }
  0x18   :  { %305 = vmatpush3.bf16.msk.msra.mxu0 %vm304_vm3, %v303_v29 }
  0x1b   :  { %274 = vmatmul.mubr.msk.f32.vlgmr.msra.gmra.mrb[0].mxu0 %vm56_vm4, %v36_v30 }
  0xee   :  { %v130_v35 = vpop.f32.mrb[0].mxu0 }
  0xef   :  { %v131_v36 = vadd.f32 %v226_v34, %v130_v35  ;;  %v275_v37 = vpop.f32.mrb[1].mxu0 }
  0xf1   :  { %v134_v38 = vmax.f32 %v131_v36, 0.0 }
  0xf3   :  { %285 = vmatmul.mubr.msk.f32.vlgmr.msra.gmra.mrb[0].mxu1 %vm146_vm5, %v134_v38 }
 0x1c6   :  { %v216_v40 = vpop.f32.mrb[0].mxu1 }
 0x1c7   :  { %v217_v41 = vadd.f32 %v229_v39, %v216_v40  ;;  %v286_v42 = vpop.f32.mrb[1].mxu1 }
 0x1c9   :  { %221 = vst.msk [vmem:[%s442_s8] sm:$0x3] %vm220_vm6, %v217_v41 }

// kernel: qnetwork_forward.8
= control target key start
LH: loop header
LB: loop body
LE: loop exit
PB: predicated region body
PF: predicated region fallthrough
CT: control target
= control target key end

     0   :  { %s1530_s12 = smov 0   ;;  %s2291_s0 = inlined_call_operand.vmem [shape: f32[2,28,28], index: 0, kind: input, shape index: {}]   ;;  %s2292_s1 = inlined_call_operand.vmem [shape: f32[2,1,784], index: 1, kind: input, shape index: {}]   ;;  %s2293_s2 = inlined_call_operand.vmem [shape: f32[2,1,784], index: 2, kind: input, shape index: {}]   ;;  %s2294_s3 = inlined_call_operand.vmem [shape: f32[2,1,784], index: 3, kind: output, shape index: {}]  }
   0x1 LB: > { %s1388_s13 = sadd.s32 4294967295, %s1505_s12   ;;  %p1392_p0 = scmp.ge.s32.totalorder %s1505_s12, 1  ;;  %s1505_s12 = sphi %s1530_s12, %s13_s12  }
   0x2   : > { %p155_p1 = scmp.lt.s32.totalorder %s1505_s12, 3 }
   0x4   : > { %p156_p2 = pnand %p1392_p0, %p155_p1 }
   0x5   : > { %p186_p3 = scmp.lt.s32.totalorder (!%p156_p2), %s1388_s13, 1  ;;  %v215_v0 = vlaneseq (!%p156_p2)  ;;  %v1507_v1 = vmov (!%p156_p2), 0.0   ;;  %vm773_vm10 = vcmask (!%p156_p2), 1043456  }
   0x6   : > { %159 = sbr.rel (%p156_p2) target bundleno = 326 (0x146), region = 32  ;;  %859 = vmatprep.mubr.f32.mxu0 (!%p156_p2), %v1507_v1  ;;  %948 = vmatprep.mubr.f32.mxu1 (!%p156_p2), %v1507_v1 }
   0x7   : > { %v1546_v2 = vshrl.u32 (!%p156_p2), %v215_v0, 7 }
   0x9   : > { %v1553_v5 = vsub.s32 (!%p156_p2), 1, %v1546_v2  ;;  %v1556_v6 = vsub.s32 (!%p156_p2), 3, %v1546_v2  ;;  %v1559_v7 = vsub.s32 (!%p156_p2), 0, %v1546_v2  ;;  %v1562_v8 = vsub.s32 (!%p156_p2), 2, %v1546_v2 }
   0xa   : > { %v1565_v9 = vsub.s32 (!%p156_p2), 5, %v1546_v2  ;;  %v1568_v10 = vsub.s32 (!%p156_p2), 4, %v1546_v2  ;;  %v1573_v13 = vadd.s32 (!%p156_p2), 8, %v1546_v2  ;;  %v1576_v14 = vadd.s32 (!%p156_p2), 16, %v1546_v2 }
   0xb   : > { %v1579_v15 = vadd.s32 (!%p156_p2), 24, %v1546_v2  ;;  %v1582_v16 = vsub.s32 (!%p156_p2), 6, %v1546_v2 }
   0xd   : > { %s2298_s13 = smov (!%p186_p3, %s1388_s13), 1 }
   0xe   : > { %s1543_s14 = smul.u32 7, %s2298_s13  ;;  %s1420_s18 = sshll.u32 %s2298_s13, 5 }
   0xf   : > { %s1751_s21 = scalar_lea.vmem %s2291_s0, %s1420_s18 }
  0x10   : > { %s194_s17 = scalar_lea.vmem %s2292_s1, %s1543_s14  ;;  %s198_s24 = scalar_lea.vmem %s2293_s2, %s1543_s14 }
  0x11   : > { %v207_v3 = vld [vmem:[%s194_s17] sm:$0x7f]  ;;  %s202_s27 = scalar_lea.vmem %s2294_s3, %s1543_s14 }
  0x12   : > { %v209_v4 = vfloor.f32 %v207_v3 }
  0x14   : > { %v1570_v11 = vsub.f32 %v207_v3, %v209_v4  ;;  %v1484_v12 = vtrunc.f32 %v209_v4 }
  0x16   : > { %v1584_v17 = vcvt.f32.s32 %v1484_v12  ;;  %v1587_v18 = vsub.f32 1.0, %v1570_v11  ;;  %v1591_v19 = vrot.slane %v1570_v11, %v1553_v5  ;;  %v1595_v20 = vrot.slane %v1570_v11, %v1556_v6 }
  0x17   : > { %v1599_v21 = vrot.slane %v1570_v11, %v1559_v7  ;;  %v1603_v22 = vrot.slane %v1570_v11, %v1562_v8  ;;  %v1607_v23 = vrot.slane %v1570_v11, %v1565_v9  ;;  %v1611_v24 = vrot.slane %v1570_v11, %v1568_v10 }
  0x18   : > { %v1615_v25 = vrot.slane %v1584_v17, %v1553_v5  ;;  %v285_v26 = vrot.slane %v1587_v18, %v1553_v5  ;;  %v1620_v27 = vadd.s32 1, %v1584_v17  ;;  %v1624_v28 = vrot.slane %v1584_v17, %v1556_v6 }
  0x19   : > { %v1628_v29 = vrot.slane %v1587_v18, %v1556_v6  ;;  %v1632_v30 = vrot.slane %v1584_v17, %v1559_v7  ;;  %v1636_v31 = vrot.slane %v1587_v18, %v1559_v7  ;;  %v1640_v32 = vrot.slane %v1584_v17, %v1562_v8 }
  0x1a   : > { %vm249_vm0 = vcmp.eq.s32.totalorder %v1546_v2, %v1615_v25  ;;  %vm256_vm1 = vcmp.eq.s32.totalorder %v1573_v13, %v1615_v25  ;;  %v349_v33 = vrot.slane %v1620_v27, %v1553_v5  ;;  %vm251_vm2 = vcmp.eq.s32.totalorder %v1546_v2, %v1624_v28 }
  0x1b   : > { %v314_v34 = vsel %vm249_vm0, %v285_v26, 0.0  ;;  %v321_v35 = vsel %vm256_vm1, %v285_v26, 0.0  ;;  %vm258_vm3 = vcmp.eq.s32.totalorder %v1573_v13, %v1624_v28  ;;  %v316_v36 = vsel %vm251_vm2, %v1628_v29, 0.0 }
  0x1c   : > { %vm371_vm4 = vcmp.eq.s32.totalorder %v1546_v2, %v349_v33  ;;  %vm378_vm5 = vcmp.eq.s32.totalorder %v1573_v13, %v349_v33  ;;  %v323_v37 = vsel %vm258_vm3, %v1628_v29, 0.0  ;;  %v1658_v38 = vrot.slane %v1620_v27, %v1556_v6 }
  0x1d   : > { %v435_v39 = vsel %vm371_vm4, %v1591_v19, 0.0  ;;  %v442_v40 = vsel %vm378_vm5, %v1591_v19, 0.0  ;;  %vm248_vm6 = vcmp.eq.s32.totalorder %v1546_v2, %v1632_v30  ;;  %vm255_vm7 = vcmp.eq.s32.totalorder %v1573_v13, %v1632_v30 }
  0x1e   : > { %v463_v41 = vadd.f32 %v435_v39, %v314_v34  ;;  %v470_v42 = vadd.f32 %v442_v40, %v321_v35  ;;  %vm373_vm8 = vcmp.eq.s32.totalorder %v1546_v2, %v1658_v38  ;;  %vm380_vm9 = vcmp.eq.s32.totalorder %v1573_v13, %v1658_v38 }
  0x1f   : > { %v437_v43 = vsel %vm373_vm8, %v1595_v20, 0.0  ;;  %v444_v44 = vsel %vm380_vm9, %v1595_v20, 0.0  ;;  %v313_v45 = vsel %vm248_vm6, %v1636_v31, 0.0  ;;  %v320_v46 = vsel %vm255_vm7, %v1636_v31, 0.0 }
  0x20   : > { %v1443_v47 = vpack.c.bf16 %v470_v42, %v463_v41  ;;  %v465_v48 = vadd.f32 %v437_v43, %v316_v36  ;;  %v472_v49 = vadd.f32 %v444_v44, %v323_v37  ;;  %v345_v50 = vrot.slane %v1620_v27, %v1559_v7 }
  0x21   : > { %vm250_vm11 = vcmp.eq.s32.totalorder %v1546_v2, %v1640_v32  ;;  %vm257_vm12 = vcmp.eq.s32.totalorder %v1573_v13, %v1640_v32  ;;  %v1682_v51 = vrot.slane %v1587_v18, %v1562_v8  ;;  %v1686_v52 = vrot.slane %v1620_v27, %v1562_v8 }
  0x22   : > { %1444 = vmatprep.subr.bf16.mxu0 %v1443_v47  ;;  %v1453_v53 = vpack.c.bf16 %v472_v49, %v465_v48  ;;  %vm370_vm13 = vcmp.eq.s32.totalorder %v1546_v2, %v345_v50  ;;  %vm377_vm14 = vcmp.eq.s32.totalorder %v1573_v13, %v345_v50  ;;  %vm263_vm15 = vcmp.eq.s32.totalorder %v1576_v14, %v1615_v25 }
  0x23   : > { %v434_v54 = vsel %vm370_vm13, %v1599_v21, 0.0  ;;  %v441_v55 = vsel %vm377_vm14, %v1599_v21, 0.0  ;;  %v315_v56 = vsel %vm250_vm11, %v1682_v51, 0.0  ;;  %v322_v57 = vsel %vm257_vm12, %v1682_v51, 0.0 }
  0x24   : > { %1454 = vmatprep.subr.bf16.mxu1 %v1453_v53  ;;  %v462_v58 = vadd.f32 %v434_v54, %v313_v45  ;;  %v469_v59 = vadd.f32 %v441_v55, %v320_v46  ;;  %vm372_vm0 = vcmp.eq.s32.totalorder %v1546_v2, %v1686_v52  ;;  %vm379_vm1 = vcmp.eq.s32.totalorder %v1573_v13, %v1686_v52 }
  0x25   : > { %v436_v60 = vsel %vm372_vm0, %v1603_v22, 0.0  ;;  %v443_v61 = vsel %vm379_vm1, %v1603_v22, 0.0  ;;  %vm270_vm2 = vcmp.eq.s32.totalorder %v1579_v15, %v1615_v25  ;;  %v328_v62 = vsel %vm263_vm15, %v285_v26, 0.0 }
  0x26   : > { %v1445_v63 = vpack.c.bf16 %v469_v59, %v462_v58  ;;  %v464_v3 = vadd.f32 %v436_v60, %v315_v56  ;;  %v471_v4 = vadd.f32 %v443_v61, %v322_v57  ;;  %v335_v12 = vsel %vm270_vm2, %v285_v26, 0.0 }
  0x27   : > { %vm385_vm3 = vcmp.eq.s32.totalorder %v1576_v14, %v349_v33  ;;  %vm392_vm4 = vcmp.eq.s32.totalorder %v1579_v15, %v349_v33  ;;  %vm265_vm5 = vcmp.eq.s32.totalorder %v1576_v14, %v1624_v28  ;;  %vm272_vm6 = vcmp.eq.s32.totalorder %v1579_v15, %v1624_v28  ;;  %v208_v28 = vld [vmem:[%s198_s24] sm:$0x7f] }
  0x28   : > { %1446 = vmatpush1.bf16.msra.mxu0 %v1445_v63  ;;  %v1455_v34 = vpack.c.bf16 %v471_v4, %v464_v3  ;;  %v449_v35 = vsel %vm385_vm3, %v1591_v19, 0.0  ;;  %v456_v25 = vsel %vm392_vm4, %v1591_v19, 0.0  ;;  %v330_v36 = vsel %vm265_vm5, %v1628_v29, 0.0  ;;  %v1795_v4 = vld [vmem:[%s1751_s21 + $0x8] sm:$0xff] }
  0x29   : > { %v477_v37 = vadd.f32 %v449_v35, %v328_v62  ;;  %v484_v26 = vadd.f32 %v456_v25, %v335_v12  ;;  %v337_v39 = vsel %vm272_vm6, %v1628_v29, 0.0  ;;  %vm387_vm7 = vcmp.eq.s32.totalorder %v1576_v14, %v1658_v38 }
  0x2a   : > { %1456 = vmatpush1.bf16.msra.mxu1 %v1455_v34  ;;  %vm1508_vm8 = vmmov 1   ;;  %vm394_vm11 = vcmp.eq.s32.totalorder %v1579_v15, %v1658_v38  ;;  %v451_v19 = vsel %vm387_vm7, %v1595_v20, 0.0  ;;  %vm262_vm12 = vcmp.eq.s32.totalorder %v1576_v14, %v1632_v30 }
  0x2b   : > { %vm1717_vm9 = vmpackc.low %vm773_vm10, %vm1508_vm8  ;;  %vm269_vm13 = vcmp.eq.s32.totalorder %v1579_v15, %v1632_v30  ;;  %vm760_vm14 = vcmask 228352   ;;  %v1447_v29 = vpack.c.bf16 %v484_v26, %v477_v37  ;;  %v458_v33 = vsel %vm394_vm11, %v1595_v20, 0.0 }
  0x2c   : > { %v479_v40 = vadd.f32 %v451_v19, %v330_v36  ;;  %v327_v41 = vsel %vm262_vm12, %v1636_v31, 0.0  ;;  %v486_v42 = vadd.f32 %v458_v33, %v337_v39  ;;  %v334_v43 = vsel %vm269_vm13, %v1636_v31, 0.0 }
  0x2d   : > { %vm384_vm15 = vcmp.eq.s32.totalorder %v1576_v14, %v345_v50  ;;  %vm391_vm0 = vcmp.eq.s32.totalorder %v1579_v15, %v345_v50  ;;  %1449 = vmatprep.subr.msk.bf16.mxu0 %vm1717_vm9, %v1447_v29  ;;  %vm264_vm1 = vcmp.eq.s32.totalorder %v1576_v14, %v1640_v32  ;;  %vm271_vm2 = vcmp.eq.s32.totalorder %v1579_v15, %v1640_v32  ;;  %v1813_v29 = vld [vmem:[%s1751_s21 + $0x10] sm:$0xff] }
  0x2e   : > { %v448_v30 = vsel %vm384_vm15, %v1599_v21, 0.0  ;;  %v455_v38 = vsel %vm391_vm0, %v1599_v21, 0.0  ;;  %v1457_v20 = vpack.c.bf16 %v486_v42, %v479_v40  ;;  %v329_v45 = vsel %vm264_vm1, %v1682_v51, 0.0 }
  0x2f   : > { %v476_v31 = vadd.f32 %v448_v30, %v327_v41  ;;  %v483_v44 = vadd.f32 %v455_v38, %v334_v43  ;;  %v336_v46 = vsel %vm271_vm2, %v1682_v51, 0.0  ;;  %vm386_vm3 = vcmp.eq.s32.totalorder %v1576_v14, %v1686_v52 }
  0x30   : > { %vm393_vm4 = vcmp.eq.s32.totalorder %v1579_v15, %v1686_v52  ;;  %v243_v21 = vrot.slane %v1584_v17, %v1565_v9  ;;  %1459 = vmatprep.subr.msk.bf16.mxu1 %vm1717_vm9, %v1457_v20  ;;  %v450_v47 = vsel %vm386_vm3, %v1603_v22, 0.0  ;;  %v301_v49 = vrot.slane %v1587_v18, %v1565_v9  ;;  %v1766_v52 = vld [vmem:[%s1751_s21] sm:$0xff] }
  0x31   : > { %v1450_v32 = vpack.c.bf16 %v483_v44, %v476_v31  ;;  %v457_v48 = vsel %vm393_vm4, %v1603_v22, 0.0  ;;  %v478_v50 = vadd.f32 %v450_v47, %v329_v45  ;;  %v365_v55 = vrot.slane %v1620_v27, %v1565_v9 }
  0x32   : > { %v485_v51 = vadd.f32 %v457_v48, %v336_v46  ;;  %vm253_vm5 = vcmp.eq.s32.totalorder %v1546_v2, %v243_v21  ;;  %vm260_vm6 = vcmp.eq.s32.totalorder %v1573_v13, %v243_v21  ;;  %v239_v22 = vrot.slane %v1584_v17, %v1568_v10 }
  0x33   : > { %1452 = vmatpush1.bf16.msk.msra.mxu0 %vm1717_vm9, %v1450_v32  ;;  %v318_v53 = vsel %vm253_vm5, %v301_v49, 0.0  ;;  %v325_v54 = vsel %vm260_vm6, %v301_v49, 0.0  ;;  %v297_v57 = vrot.slane %v1587_v18, %v1568_v10  ;;  %v1776_v58 = vrot.slane %v1620_v27, %v1568_v10 }
  0x34   : > { %v1460_v56 = vpack.c.bf16 %v485_v51, %v478_v50  ;;  %vm267_vm7 = vcmp.eq.s32.totalorder %v1576_v14, %v243_v21  ;;  %vm375_vm8 = vcmp.eq.s32.totalorder %v1546_v2, %v365_v55  ;;  %vm382_vm11 = vcmp.eq.s32.totalorder %v1573_v13, %v365_v55 }
  0x35   : > { %vm252_vm12 = vcmp.eq.s32.totalorder %v1546_v2, %v239_v22  ;;  %vm259_vm13 = vcmp.eq.s32.totalorder %v1573_v13, %v239_v22  ;;  %v439_v59 = vsel %vm375_vm8, %v1607_v23, 0.0  ;;  %v446_v60 = vsel %vm382_vm11, %v1607_v23, 0.0 }
  0x36   : > { %1462 = vmatpush1.bf16.msk.msra.mxu1 %vm1717_vm9, %v1460_v56  ;;  %1397 = vmatmul.mubr.msk.f32.vlgmr.msra.gmra.mrb[0].mxu0 %vm760_vm14, %v1766_v52  ;;  %v317_v61 = vsel %vm252_vm12, %v297_v57, 0.0  ;;  %v324_v62 = vsel %vm259_vm13, %v297_v57, 0.0  ;;  %v467_v63 = vadd.f32 %v439_v59, %v318_v53  ;;  %v474_v3 = vadd.f32 %v446_v60, %v325_v54 }
  0x37   : > { %vm374_vm15 = vcmp.eq.s32.totalorder %v1546_v2, %v1776_v58  ;;  %vm381_vm0 = vcmp.eq.s32.totalorder %v1573_v13, %v1776_v58  ;;  %865 = vmatprep.mubr.f32.mxu0 %v1507_v1  ;;  %vm274_vm1 = vcmp.eq.s32.totalorder %v1579_v15, %v243_v21  ;;  %v332_v35 = vsel %vm267_vm7, %v301_v49, 0.0 }
  0x38   : > { %v438_v12 = vsel %vm374_vm15, %v1611_v24, 0.0  ;;  %v445_v34 = vsel %vm381_vm0, %v1611_v24, 0.0  ;;  %v1463_v25 = vpack.c.bf16 %v474_v3, %v467_v63  ;;  %v339_v26 = vsel %vm274_vm1, %v301_v49, 0.0 }
  0x39   : > { %1403 = vmatmul.mubr.msk.f32.vlgmr.msra.gmra.mrb[0].mxu1 %vm760_vm14, %v1766_v52  ;;  %v466_v36 = vadd.f32 %v438_v12, %v317_v61  ;;  %v473_v37 = vadd.f32 %v445_v34, %v324_v62  ;;  %vm389_vm2 = vcmp.eq.s32.totalorder %v1576_v14, %v365_v55  ;;  %vm396_vm3 = vcmp.eq.s32.totalorder %v1579_v15, %v365_v55 }
  0x3a   : > { %954 = vmatprep.mubr.f32.mxu1 %v1507_v1  ;;  %1398 = vmatmul.mubr.msk.f32.gmra.mrb[2].mxu0 %vm760_vm14, %v1795_v4  ;;  %v247_v39 = vrot.slane %v1584_v17, %v1582_v16  ;;  %v453_v33 = vsel %vm389_vm2, %v1607_v23, 0.0  ;;  %v460_v40 = vsel %vm396_vm3, %v1607_v23, 0.0  ;;  %v305_v41 = vrot.slane %v1587_v18, %v1582_v16 }
  0x3b   : > { %1464 = vmatprep.subr.bf16.mxu0 %v1463_v25  ;;  %v1465_v19 = vpack.c.bf16 %v473_v37, %v466_v36  ;;  %871 = vmatprep.mubr.f32.mxu0 %v1507_v1  ;;  %v481_v42 = vadd.f32 %v453_v33, %v332_v35  ;;  %v488_v43 = vadd.f32 %v460_v40, %v339_v26 }
  0x3c   : > { %vm254_vm4 = vcmp.eq.s32.totalorder %v1546_v2, %v247_v39  ;;  %vm261_vm5 = vcmp.eq.s32.totalorder %v1573_v13, %v247_v39  ;;  %v369_v30 = vrot.slane %v1620_v27, %v1582_v16  ;;  %v426_v23 = vrot.slane %v1570_v11, %v1582_v16  ;;  %v206_v11 = vld [vmem:[%s1751_s21 + $0x18] sm:$0xf] }
  0x3d   : > { %1466 = vmatpush1.bf16.msra.mxu0 %v1465_v19  ;;  %1404 = vmatmul.mubr.msk.f32.gmra.mrb[2].mxu1 %vm760_vm14, %v1795_v4  ;;  %v319_v17 = vsel %vm254_vm4, %v305_v41, 0.0  ;;  %v1467_v18 = vpack.c.bf16 %v488_v43, %v481_v42  ;;  %v326_v38 = vsel %vm261_vm5, %v305_v41, 0.0  ;;  %vm266_vm6 = vcmp.eq.s32.totalorder %v1576_v14, %v239_v22 }
  0x3e   : > { %960 = vmatprep.mubr.f32.mxu1 %v1507_v1  ;;  %1399 = vmatmul.mubr.msk.f32.gmra.mrb[4].mxu0 %vm760_vm14, %v1813_v29  ;;  %vm273_vm7 = vcmp.eq.s32.totalorder %v1579_v15, %v239_v22  ;;  %vm376_vm8 = vcmp.eq.s32.totalorder %v1546_v2, %v369_v30  ;;  %vm383_vm11 = vcmp.eq.s32.totalorder %v1573_v13, %v369_v30  ;;  %v331_v20 = vsel %vm266_vm6, %v297_v57, 0.0 }
  0x3f   : > { %v338_v27 = vsel %vm273_vm7, %v297_v57, 0.0  ;;  %877 = vmatprep.mubr.f32.mxu0 %v1507_v1  ;;  %1469 = vmatprep.subr.msk.bf16.mxu0 %vm1717_vm9, %v1467_v18  ;;  %v440_v31 = vsel %vm376_vm8, %v426_v23, 0.0  ;;  %v447_v44 = vsel %vm383_vm11, %v426_v23, 0.0  ;;  %vm388_vm12 = vcmp.eq.s32.totalorder %v1576_v14, %v1776_v58 }
  0x40   : > { %vm395_vm13 = vcmp.eq.s32.totalorder %v1579_v15, %v1776_v58  ;;  %v468_v45 = vadd.f32 %v440_v31, %v319_v17  ;;  %v475_v46 = vadd.f32 %v447_v44, %v326_v38  ;;  %v452_v21 = vsel %vm388_vm12, %v1611_v24, 0.0 }
  0x41   : > { %1405 = vmatmul.mubr.msk.f32.gmra.mrb[4].mxu1 %vm760_vm14, %v1813_v29  ;;  %v459_v32 = vsel %vm395_vm13, %v1611_v24, 0.0  ;;  %v480_v47 = vadd.f32 %v452_v21, %v331_v20  ;;  %vm268_vm15 = vcmp.eq.s32.totalorder %v1576_v14, %v247_v39  ;;  %vm275_vm0 = vcmp.eq.s32.totalorder %v1579_v15, %v247_v39 }
  0x42   : > { %v487_v48 = vadd.f32 %v459_v32, %v338_v27  ;;  %966 = vmatprep.mubr.f32.mxu1 %v1507_v1  ;;  %1400 = vmatmul.mubr.msk.f32.gmra.mrb[6].mxu0 %vm760_vm14, %v206_v11  ;;  %v1473_v49 = vpack.c.bf16 %v475_v46, %v468_v45  ;;  %v333_v50 = vsel %vm268_vm15, %v305_v41, 0.0  ;;  %vm390_vm1 = vcmp.eq.s32.totalorder %v1576_v14, %v369_v30 }
  0x43   : > { %1037 = vmatprep.mubr.f32.mxu0 %v1507_v1  ;;  %v340_v53 = vsel %vm275_vm0, %v305_v41, 0.0  ;;  %vm397_vm2 = vcmp.eq.s32.totalorder %v1579_v15, %v369_v30  ;;  %v454_v24 = vsel %vm390_vm1, %v426_v23, 0.0 }
  0x44   : > { %v1470_v51 = vpack.c.bf16 %v487_v48, %v480_v47  ;;  %1474 = vmatprep.subr.bf16.mxu1 %v1473_v49  ;;  %v461_v54 = vsel %vm397_vm2, %v426_v23, 0.0  ;;  %v482_v55 = vadd.f32 %v454_v24, %v333_v50 }
  0x45   : > { %1406 = vmatmul.mubr.msk.f32.gmra.mrb[6].mxu1 %vm760_vm14, %v206_v11  ;;  %v489_v22 = vadd.f32 %v461_v54, %v340_v53 }
  0x46   : > { %1472 = vmatpush1.bf16.msk.msra.mxu0 %vm1717_vm9, %v1470_v51  ;;  %1476 = vmatpush3.bf16.msra.mxu1 %v1473_v49 }
  0x47   : > { %1437 = vmatprep.mubr.msk.f32.mxu1 %vm760_vm14, %v1766_v52  ;;  %v1477_v56 = vpack.c.bf16 %v489_v22, %v482_v55 }
  0x49   : > { %1409 = vmatmul.mubr.msk.f32.vlgmr.msra.gmra.mrb[8].mxu0 %vm760_vm14, %v1766_v52  ;;  %1479 = vmatprep.subr.msk.bf16.mxu1 %vm1717_vm9, %v1477_v56  ;;  %v210_v52 = vfloor.f32 %v208_v28 }
  0x4a   : > { %1043 = vmatprep.mubr.f32.mxu0 %v1507_v1  ;;  %1482 = vmatpush3.bf16.msk.msra.mxu1 %vm1717_vm9, %v1477_v56 }
  0x4b   : > { %v1486_v57 = vtrunc.f32 %v210_v52  ;;  %v1883_v59 = vsub.f32 %v208_v28, %v210_v52 }
  0x4d   : > { %1410 = vmatmul.mubr.msk.f32.gmra.mrb[10].mxu0 %vm760_vm14, %v1795_v4  ;;  %1438 = vmatmul.mubr.msk.f32.vlgmr.msra.gmra.mrb[8].mxu1 %vm760_vm14, %v1795_v4  ;;  %v1881_v58 = vcvt.f32.s32 %v1486_v57  ;;  %v1889_v61 = vsub.f32 1.0, %v1883_v59  ;;  %v1915_v12 = vrot.slane %v1883_v59, %v1559_v7  ;;  %v1933_v36 = vrot.slane %v1883_v59, %v1553_v5 }
  0x4e   : > { %1049 = vmatprep.mubr.f32.mxu0 %v1507_v1  ;;  %1440 = vmatprep.mubr.msk.f32.mxu1 %vm760_vm14, %v1813_v29  ;;  %v1998_v27 = vrot.slane %v1883_v59, %v1556_v6 }
  0x4f   : > { %v1886_v60 = vadd.s32 1, %v1881_v58  ;;  %v1901_v63 = vrot.slane %v1881_v58, %v1553_v5  ;;  %v1909_v4 = vrot.slane %v1889_v61, %v1559_v7  ;;  %v1919_v34 = vrot.slane %v1881_v58, %v1562_v8 }
  0x50   : > { %v1929_v25 = vrot.slane %v1889_v61, %v1553_v5  ;;  %v1957_v37 = vrot.slane %v1881_v58, %v1556_v6  ;;  %v1976_v42 = vrot.slane %v1889_v61, %v1556_v6 }
  0x51   : > { %1411 = vmatmul.mubr.msk.f32.gmra.mrb[12].mxu0 %vm760_vm14, %v1813_v29  ;;  %1441 = vmatmul.mubr.msk.f32.gmra.mrb[10].mxu1 %vm760_vm14, %v206_v11  ;;  %v1897_v62 = vrot.slane %v1886_v60, %v1559_v7  ;;  %v1905_v3 = vrot.slane %v1886_v60, %v1553_v5  ;;  %v1923_v35 = vrot.slane %v1886_v60, %v1562_v8 }
  0x52   : > { %1055 = vmatprep.mubr.f32.mxu0 %v1507_v1  ;;  %v1893_v1 = vrot.slane %v1881_v58, %v1559_v7  ;;  %vm519_vm4 = vcmp.eq.s32.totalorder %v1546_v2, %v1901_v63  ;;  %vm526_vm7 = vcmp.eq.s32.totalorder %v1573_v13, %v1901_v63  ;;  %v1949_v5 = vrot.slane %v1889_v61, %v1562_v8 }
  0x53   : > { %vm641_vm5 = vcmp.eq.s32.totalorder %v1546_v2, %v1905_v3  ;;  %vm647_vm6 = vcmp.eq.s32.totalorder %v1573_v13, %v1897_v62  ;;  %vm648_vm8 = vcmp.eq.s32.totalorder %v1573_v13, %v1905_v3  ;;  %v1953_v7 = vrot.slane %v1883_v59, %v1562_v8 }
  0x54   : > { %vm518_vm9 = vcmp.eq.s32.totalorder %v1546_v2, %v1893_v1  ;;  %vm525_vm3 = vcmp.eq.s32.totalorder %v1573_v13, %v1893_v1  ;;  %vm520_vm11 = vcmp.eq.s32.totalorder %v1546_v2, %v1919_v34  ;;  %vm642_vm12 = vcmp.eq.s32.totalorder %v1546_v2, %v1923_v35 }
  0x55   : > { %1412 = vmatmul.mubr.msk.f32.gmra.mrb[14].mxu0 %vm760_vm14, %v206_v11  ;;  %vm640_vm14 = vcmp.eq.s32.totalorder %v1546_v2, %v1897_v62  ;;  %v583_v26 = vsel %vm518_vm9, %v1909_v4, 0.0  ;;  %v584_v8 = vsel %vm519_vm4, %v1929_v25, 0.0  ;;  %v705_v19 = vsel %vm641_vm5, %v1933_v36, 0.0 }
  0x56   : > { %v704_v39 = vsel %vm640_vm14, %v1915_v12, 0.0  ;;  %v590_v29 = vsel %vm525_vm3, %v1909_v4, 0.0  ;;  %v711_v33 = vsel %vm647_vm6, %v1915_v12, 0.0  ;;  %v591_v40 = vsel %vm526_vm7, %v1929_v25, 0.0 }
  0x57   : > { %v712_v41 = vsel %vm648_vm8, %v1933_v36, 0.0  ;;  %v1980_v43 = vrot.slane %v1886_v60, %v1556_v6  ;;  %v585_v17 = vsel %vm520_vm11, %v1949_v5, 0.0  ;;  %v706_v30 = vsel %vm642_vm12, %v1953_v7, 0.0 }
  0x58   : > { %vm521_vm13 = vcmp.eq.s32.totalorder %v1546_v2, %v1957_v37  ;;  %vm532_vm15 = vcmp.eq.s32.totalorder %v1576_v14, %v1893_v1  ;;  %v1988_v23 = vadd.f32 %v704_v39, %v583_v26  ;;  %v1990_v18 = vadd.f32 %v705_v19, %v584_v8 }
  0x59   : > { %v1992_v38 = vadd.f32 %v711_v33, %v590_v29  ;;  %v1994_v20 = vadd.f32 %v712_v41, %v591_v40  ;;  %v2000_v11 = vadd.f32 %v706_v30, %v585_v17  ;;  %v586_v31 = vsel %vm521_vm13, %v1976_v42, 0.0 }
  0x5a   : > { %vm643_vm0 = vcmp.eq.s32.totalorder %v1546_v2, %v1980_v43  ;;  %v597_v44 = vsel %vm532_vm15, %v1909_v4, 0.0  ;;  %vm654_vm1 = vcmp.eq.s32.totalorder %v1576_v14, %v1897_v62  ;;  %vm527_vm2 = vcmp.eq.s32.totalorder %v1573_v13, %v1919_v34 }
  0x5b   : > { %vm649_vm9 = vcmp.eq.s32.totalorder %v1573_v13, %v1923_v35  ;;  %vm533_vm14 = vcmp.eq.s32.totalorder %v1576_v14, %v1901_v63  ;;  %vm655_vm3 = vcmp.eq.s32.totalorder %v1576_v14, %v1905_v3  ;;  %vm528_vm4 = vcmp.eq.s32.totalorder %v1573_v13, %v1957_v37 }
  0x5c   : > { %vm650_vm5 = vcmp.eq.s32.totalorder %v1573_v13, %v1980_v43  ;;  %vm534_vm6 = vcmp.eq.s32.totalorder %v1576_v14, %v1919_v34  ;;  %v707_v6 = vsel %vm643_vm0, %v1998_v27, 0.0  ;;  %vm656_vm7 = vcmp.eq.s32.totalorder %v1576_v14, %v1923_v35 }
  0x5d   : > { %vm535_vm8 = vcmp.eq.s32.totalorder %v1576_v14, %v1957_v37  ;;  %vm657_vm11 = vcmp.eq.s32.totalorder %v1576_v14, %v1980_v43  ;;  %v718_v45 = vsel %vm654_vm1, %v1915_v12, 0.0  ;;  %v592_v46 = vsel %vm527_vm2, %v1949_v5, 0.0 }
  0x5e   : > { %v713_v21 = vsel %vm649_vm9, %v1953_v7, 0.0  ;;  %v598_v32 = vsel %vm533_vm14, %v1929_v25, 0.0  ;;  %v719_v47 = vsel %vm655_vm3, %v1933_v36, 0.0  ;;  %v593_v48 = vsel %vm528_vm4, %v1976_v42, 0.0 }
  0x5f   : > { %v714_v49 = vsel %vm650_vm5, %v1998_v27, 0.0  ;;  %v599_v50 = vsel %vm534_vm6, %v1949_v5, 0.0  ;;  %v720_v51 = vsel %vm656_vm7, %v1953_v7, 0.0  ;;  %v600_v53 = vsel %vm535_vm8, %v1976_v42, 0.0 }
  0x60   : > { %v721_v24 = vsel %vm657_vm11, %v1998_v27, 0.0  ;;  %vm539_vm12 = vcmp.eq.s32.totalorder %v1579_v15, %v1893_v1  ;;  %v2042_v54 = vadd.f32 %v707_v6, %v586_v31  ;;  %v2044_v55 = vadd.f32 %v718_v45, %v597_v44 }
  0x61   : > { %vm661_vm13 = vcmp.eq.s32.totalorder %v1579_v15, %v1897_v62  ;;  %vm541_vm15 = vcmp.eq.s32.totalorder %v1579_v15, %v1919_v34  ;;  %v2050_v22 = vadd.f32 %v713_v21, %v592_v46  ;;  %v2052_v56 = vadd.f32 %v719_v47, %v598_v32 }
  0x62   : > { %vm663_vm0 = vcmp.eq.s32.totalorder %v1579_v15, %v1923_v35  ;;  %vm540_vm1 = vcmp.eq.s32.totalorder %v1579_v15, %v1901_v63  ;;  %v2058_v28 = vadd.f32 %v714_v49, %v593_v48  ;;  %v2060_v52 = vadd.f32 %v720_v51, %v599_v50 }
  0x63   : > { %v2062_v57 = vadd.f32 %v721_v24, %v600_v53  ;;  %v604_v1 = vsel %vm539_vm12, %v1909_v4, 0.0  ;;  %v725_v62 = vsel %vm661_vm13, %v1915_v12, 0.0  ;;  %v606_v34 = vsel %vm541_vm15, %v1949_v5, 0.0 }
  0x64   : > { %v2069_v26 = vrot.slane %v1881_v58, %v1568_v10  ;;  %v2073_v35 = vrot.slane %v1886_v60, %v1568_v10  ;;  %v727_v63 = vsel %vm663_vm0, %v1953_v7, 0.0  ;;  %v605_v39 = vsel %vm540_vm1, %v1929_v25, 0.0 }
  0x65   : > { %v2079_v8 = vrot.slane %v1881_v58, %v1565_v9  ;;  %v2083_v4 = vrot.slane %v1886_v60, %v1565_v9  ;;  %vm662_vm2 = vcmp.eq.s32.totalorder %v1579_v15, %v1905_v3  ;;  %vm542_vm9 = vcmp.eq.s32.totalorder %v1579_v15, %v1957_v37 }
  0x66   : > { %v2091_v12 = vrot.slane %v1881_v58, %v1582_v16  ;;  %v2095_v25 = vrot.slane %v1886_v60, %v1582_v16  ;;  %vm664_vm14 = vcmp.eq.s32.totalorder %v1579_v15, %v1980_v43  ;;  %v2101_v5 = vrot.slane %v1889_v61, %v1568_v10 }
  0x67   : > { %v2105_v7 = vrot.slane %v1883_v59, %v1568_v10  ;;  %vm522_vm3 = vcmp.eq.s32.totalorder %v1546_v2, %v2069_v26  ;;  %vm644_vm4 = vcmp.eq.s32.totalorder %v1546_v2, %v2073_v35  ;;  %v2113_v58 = vrot.slane %v1889_v61, %v1565_v9 }
  0x68   : > { %v2117_v60 = vrot.slane %v1883_v59, %v1565_v9  ;;  %vm523_vm5 = vcmp.eq.s32.totalorder %v1546_v2, %v2079_v8  ;;  %vm645_vm6 = vcmp.eq.s32.totalorder %v1546_v2, %v2083_v4  ;;  %v2125_v10 = vrot.slane %v1889_v61, %v1582_v16 }
  0x69   : > { %v2129_v19 = vrot.slane %v1883_v59, %v1582_v16  ;;  %v1509_v29 = vmov 1966171168   ;;  %vm531_vm7 = vcmp.eq.s32.totalorder %v1573_v13, %v2091_v12  ;;  %vm653_vm8 = vcmp.eq.s32.totalorder %v1573_v13, %v2095_v25 }
  0x6a   : > { %v1261_v33 = vunpack.c.l.s4 %v1509_v29  ;;  %vm524_vm11 = vcmp.eq.s32.totalorder %v1546_v2, %v2091_v12  ;;  %v726_v9 = vsel %vm662_vm2, %v1933_v36, 0.0  ;;  %v607_v16 = vsel %vm542_vm9, %v1976_v42, 0.0 }
  0x6b   : > { %v728_v59 = vsel %vm664_vm14, %v1998_v27, 0.0  ;;  %vm646_vm12 = vcmp.eq.s32.totalorder %v1546_v2, %v2095_v25  ;;  %v587_v61 = vsel %vm522_vm3, %v2101_v5, 0.0  ;;  %v708_v3 = vsel %vm644_vm4, %v2105_v7, 0.0 }
  0x6c   : > { %v588_v36 = vsel %vm523_vm5, %v2113_v58, 0.0  ;;  %v709_v37 = vsel %vm645_vm6, %v2117_v60, 0.0  ;;  %v596_v41 = vsel %vm531_vm7, %v2125_v10, 0.0  ;;  %v717_v42 = vsel %vm653_vm8, %v2129_v19, 0.0 }
  0x6d   : > { %v589_v43 = vsel %vm524_vm11, %v2125_v10, 0.0  ;;  %vm529_vm13 = vcmp.eq.s32.totalorder %v1573_v13, %v2069_v26  ;;  %v1262_v27 = vunpack.c.0.s8 %v1261_v33  ;;  %v710_v31 = vsel %vm646_vm12, %v2129_v19, 0.0 }
  0x6e   : > { %vm651_vm15 = vcmp.eq.s32.totalorder %v1573_v13, %v2073_v35  ;;  %v753_v44 = vadd.f32 %v725_v62, %v604_v1  ;;  %v2170_v6 = vadd.f32 %v727_v63, %v606_v34  ;;  %vm545_vm0 = vcmp.eq.s32.totalorder %v1579_v15, %v2091_v12 }
  0x6f   : > { %vm667_vm1 = vcmp.eq.s32.totalorder %v1579_v15, %v2095_v25  ;;  %v754_v46 = vadd.f32 %v726_v9, %v605_v39  ;;  %v2176_v21 = vadd.f32 %v728_v59, %v607_v16  ;;  %v2180_v32 = vadd.f32 %v709_v37, %v588_v36 }
  0x70   : > { %v2182_v49 = vadd.f32 %v717_v42, %v596_v41  ;;  %v2184_v50 = vadd.f32 %v710_v31, %v589_v43  ;;  %v594_v51 = vsel %vm529_vm13, %v2101_v5, 0.0  ;;  %v715_v53 = vsel %vm651_vm15, %v2105_v7, 0.0 }
  0x71   : > { %v2193_v62 = vsub.s32 %v1262_v27, %v1546_v2  ;;  %v610_v34 = vsel %vm545_vm0, %v2125_v10, 0.0  ;;  %v731_v63 = vsel %vm667_vm1, %v2129_v19, 0.0  ;;  %vm530_vm2 = vcmp.eq.s32.totalorder %v1573_v13, %v2079_v8 }
  0x72   : > { %v2209_v16 = vadd.f32 %v715_v53, %v594_v51  ;;  %vm652_vm9 = vcmp.eq.s32.totalorder %v1573_v13, %v2083_v4  ;;  %vm538_vm14 = vcmp.eq.s32.totalorder %v1576_v14, %v2091_v12  ;;  %v595_v37 = vsel %vm530_vm2, %v2113_v58, 0.0 }
  0x73   : > { %vm660_vm3 = vcmp.eq.s32.totalorder %v1576_v14, %v2095_v25  ;;  %vm536_vm4 = vcmp.eq.s32.totalorder %v1576_v14, %v2069_v26  ;;  %vm658_vm5 = vcmp.eq.s32.totalorder %v1576_v14, %v2073_v35  ;;  %vm537_vm6 = vcmp.eq.s32.totalorder %v1576_v14, %v2079_v8 }
  0x74   : > { %vm659_vm7 = vcmp.eq.s32.totalorder %v1576_v14, %v2083_v4  ;;  %vm543_vm8 = vcmp.eq.s32.totalorder %v1579_v15, %v2069_v26  ;;  %vm1235_vm11 = vcmask 130048   ;;  %vm665_vm12 = vcmp.eq.s32.totalorder %v1579_v15, %v2073_v35 }
  0x75   : > { %vm544_vm13 = vcmp.eq.s32.totalorder %v1579_v15, %v2079_v8  ;;  %vm666_vm15 = vcmp.eq.s32.totalorder %v1579_v15, %v2083_v4  ;;  %v729_v8 = vsel %vm665_vm12, %v2105_v7, 0.0  ;;  %vm1241_vm0 = vcmask 125952  }
 0x109   : > { %v861_v40 = vpop.f32.mrb[0].mxu0 }
 0x10a   : > { %v1147_v17 = vmul.f32 %v861_v40, %v1988_v23  ;;  %v863_v30 = vpop.f32.mrb[1].mxu0  ;;  %v2178_v23 = vadd.f32 %v708_v3, %v587_v61 }
 0x10b   : > { %v1148_v39 = vmul.f32 %v863_v30, %v1990_v18 }
 0x10c   : > { %v950_v45 = vpop.f32.mrb[0].mxu1 }
 0x10d   : > { %v867_v47 = vpop.f32.mrb[2].mxu0  ;;  %v952_v48 = vpop.f32.mrb[1].mxu1 }
 0x10e   : > { %v1154_v24 = vmul.f32 %v867_v47, %v1992_v38  ;;  %v869_v1 = vpop.f32.mrb[3].mxu0  ;;  %v1149_v38 = vmul.f32 %v950_v45, %v2000_v11  ;;  %v1150_v33 = vmul.f32 %v952_v48, %v2042_v54 }
 0x10f   : > { %v1155_v29 = vmul.f32 %v869_v1, %v1994_v20  ;;  %v2214_v20 = vadd.f32 %v731_v63, %v610_v34 }
 0x110   : > { %v1175_v2 = vadd.f32 %v1154_v24, %v1147_v17  ;;  %v956_v9 = vpop.f32.mrb[2].mxu1 }
 0x111   : > { %v1185_v59 = vadd.f32 %v1155_v29, %v1148_v39  ;;  %v873_v61 = vpop.f32.mrb[4].mxu0  ;;  %v1156_v18 = vmul.f32 %v956_v9, %v2050_v22  ;;  %v958_v3 = vpop.f32.mrb[3].mxu1  ;;  %v716_v22 = vsel %vm652_vm9, %v2117_v60, 0.0  ;;  %v608_v29 = vsel %vm543_vm8, %v2101_v5, 0.0 }
 0x112   : > { %v1161_v11 = vmul.f32 %v873_v61, %v2044_v55  ;;  %v875_v36 = vpop.f32.mrb[5].mxu0  ;;  %v1157_v54 = vmul.f32 %v958_v3, %v2058_v28  ;;  %v603_v55 = vsel %vm538_vm14, %v2125_v10, 0.0  ;;  %v744_v45 = vadd.f32 %v716_v22, %v595_v37 }
 0x113   : > { %v1195_v13 = vadd.f32 %v1156_v18, %v1149_v38  ;;  %v1162_v40 = vmul.f32 %v875_v36, %v2052_v56  ;;  %v724_v56 = vsel %vm660_vm3, %v2129_v19, 0.0  ;;  %v601_v10 = vsel %vm536_vm4, %v2101_v5, 0.0 }
 0x114   : > { %v1176_v41 = vadd.f32 %v1175_v2, %v1161_v11  ;;  %v1205_v12 = vadd.f32 %v1157_v54, %v1150_v33  ;;  %v962_v42 = vpop.f32.mrb[4].mxu1  ;;  %v730_v61 = vsel %vm666_vm15, %v2117_v60, 0.0  ;;  %v752_v4 = vadd.f32 %v724_v56, %v603_v55 }
 0x115   : > { %v1186_v28 = vadd.f32 %v1185_v59, %v1162_v40  ;;  %v1163_v43 = vmul.f32 %v962_v42, %v2060_v52  ;;  %v964_v25 = vpop.f32.mrb[5].mxu1  ;;  %v879_v17 = vpop.f32.mrb[6].mxu0  ;;  %v722_v52 = vsel %vm658_vm5, %v2105_v7, 0.0  ;;  %v609_v59 = vsel %vm544_vm13, %v2113_v58, 0.0 }
 0x116   : > { %v1164_v30 = vmul.f32 %v964_v25, %v2062_v57  ;;  %v1168_v27 = vmul.f32 %v879_v17, %v753_v44  ;;  %v881_v31 = vpop.f32.mrb[7].mxu0  ;;  %v602_v57 = vsel %vm537_vm6, %v2113_v58, 0.0  ;;  %v750_v3 = vadd.f32 %v722_v52, %v601_v10 }
 0x117   : > { %v1196_v47 = vadd.f32 %v1195_v13, %v1163_v43  ;;  %v1169_v48 = vmul.f32 %v881_v31, %v754_v46  ;;  %v757_v54 = vadd.f32 %v729_v8, %v608_v29  ;;  %v758_v22 = vadd.f32 %v730_v61, %v609_v59 }
 0x118   : > { %v1206_v19 = vadd.f32 %v1205_v12, %v1164_v30  ;;  %v1177_v51 = vsel %vm773_vm10, %v1168_v27, 0.0  ;;  %v968_v53 = vpop.f32.mrb[6].mxu1 }
 0x119   : > { %v1178_v44 = vadd.f32 %v1177_v51, %v1176_v41  ;;  %v1170_v24 = vmul.f32 %v968_v53, %v2170_v6  ;;  %v1187_v1 = vsel %vm773_vm10, %v1169_v48, 0.0  ;;  %v970_v46 = vpop.f32.mrb[7].mxu1  ;;  %v723_v6 = vsel %vm659_vm7, %v2117_v60, 0.0 }
 0x11a   : > { %v1188_v34 = vadd.f32 %v1187_v1, %v1186_v28  ;;  %v1171_v63 = vmul.f32 %v970_v46, %v2176_v21  ;;  %v751_v36 = vadd.f32 %v723_v6, %v602_v57 }
 0x11b   : > { %v1179_v26 = vrot.slane %v1178_v44, 4  ;;  %v1197_v39 = vsel %vm773_vm10, %v1170_v24, 0.0 }
 0x11c   : > { %v1198_v35 = vadd.f32 %v1197_v39, %v1196_v47  ;;  %v1189_v38 = vrot.slane %v1188_v34, 4  ;;  %v1207_v21 = vsel %vm773_vm10, %v1171_v63, 0.0  ;;  %v1039_v2 = vpop.f32.mrb[8].mxu0 }
 0x11d   : > { %v1180_v33 = vadd.f32 %v1179_v26, %v1178_v44  ;;  %v1208_v9 = vadd.f32 %v1207_v21, %v1206_v19  ;;  %v1041_v15 = vpop.f32.mrb[9].mxu0  ;;  %v1151_v7 = vmul.f32 %v1039_v2, %v2178_v23 }
 0x11e   : > { %v1199_v18 = vrot.slane %v1198_v35, 4  ;;  %v1190_v14 = vadd.f32 %v1189_v38, %v1188_v34  ;;  %v1152_v58 = vmul.f32 %v1041_v15, %v2180_v32 }
 0x11f   : > { %v1181_v5 = vrot.slane %v1180_v33, 2  ;;  %v1209_v11 = vrot.slane %v1208_v9, 4 }
 0x120   : > { %v1200_v37 = vadd.f32 %v1199_v18, %v1198_v35  ;;  %v1191_v13 = vrot.slane %v1190_v14, 2  ;;  %v1045_v40 = vpop.f32.mrb[10].mxu0  ;;  %v1439_v42 = vpop.f32.mrb[8].mxu1 }
 0x121   : > { %v1182_v41 = vadd.f32 %v1181_v5, %v1180_v33  ;;  %v1210_v12 = vadd.f32 %v1209_v11, %v1208_v9  ;;  %v1158_v60 = vmul.f32 %v1045_v40, %v2209_v16  ;;  %v1047_v28 = vpop.f32.mrb[11].mxu0  ;;  %v1160_v25 = vmul.f32 %v1439_v42, %v2182_v49  ;;  %v1128_v17 = vpop.f32.mrb[9].mxu1 }
 0x122   : > { %v1201_v55 = vrot.slane %v1200_v37, 2  ;;  %v1192_v43 = vadd.f32 %v1191_v13, %v1190_v14  ;;  %v1159_v56 = vmul.f32 %v1047_v28, %v744_v45  ;;  %v1153_v23 = vmul.f32 %v1128_v17, %v2184_v50 }
 0x123   : > { %v1183_v30 = vrot.slane %v1182_v41, 1  ;;  %v1211_v27 = vrot.slane %v1210_v12, 2  ;;  %v1215_v31 = vadd.f32 %v1158_v60, %v1151_v7  ;;  %v1237_v48 = vsel %vm1235_vm11, %v1160_v25, 0.0 }
 0x124   : > { %v1202_v10 = vadd.f32 %v1201_v55, %v1200_v37  ;;  %v1193_v47 = vrot.slane %v1192_v43, 1  ;;  %v1225_v32 = vadd.f32 %v1159_v56, %v1152_v58  ;;  %v1051_v52 = vpop.f32.mrb[12].mxu0  ;;  %v1236_v51 = vsel %vm1235_vm11, %v1153_v23, 0.0  ;;  %v1442_v53 = vpop.f32.mrb[10].mxu1 }
 0x125   : > { %v1184_v19 = vadd.f32 %v1183_v30, %v1182_v41  ;;  %v1212_v16 = vadd.f32 %v1211_v27, %v1210_v12  ;;  %v1165_v57 = vmul.f32 %v1051_v52, %v750_v3  ;;  %v1053_v49 = vpop.f32.mrb[13].mxu0  ;;  %v1238_v24 = vadd.f32 %v1237_v48, %v1236_v51  ;;  %v1138_v50 = vpop.f32.mrb[11].mxu1 }
 0x126   : > { %v1203_v44 = vrot.slane %v1202_v10, 1  ;;  %v1194_v45 = vadd.f32 %v1193_v47, %v1192_v43  ;;  %v1174_v1 = vmul.f32 %v1442_v53, %v2214_v20  ;;  %v1167_v34 = vmul.f32 %v1138_v50, %v752_v4 }
 0x127   : > { %v1213_v46 = vrot.slane %v1212_v16, 1  ;;  %v1216_v63 = vadd.f32 %v1215_v31, %v1165_v57  ;;  %v1166_v26 = vmul.f32 %v1053_v49, %v751_v36 }
 0x128   : > { %v1204_v39 = vadd.f32 %v1203_v44, %v1202_v10  ;;  %v1257_v6 = vcombine.low %v1184_v19, %v1194_v45  ;;  %v1242_v29 = vsel %vm1241_vm0, %v1174_v1, 0.0  ;;  %v1057_v35 = vpop.f32.mrb[14].mxu0  ;;  %v1239_v21 = vsel %vm1235_vm11, %v1167_v34, 0.0 }
 0x129   : > { %v1214_v38 = vadd.f32 %v1213_v46, %v1212_v16  ;;  %v1226_v2 = vadd.f32 %v1225_v32, %v1166_v26  ;;  %v1172_v8 = vmul.f32 %v1057_v35, %v757_v54  ;;  %v1059_v33 = vpop.f32.mrb[15].mxu0  ;;  %v1240_v9 = vadd.f32 %v1239_v21, %v1238_v24 }
 0x12a   : > { %v1173_v15 = vmul.f32 %v1059_v33, %v758_v22  ;;  %v1266_v20 = vrot.slane %v1257_v6, %v2193_v62 }
 0x12b   : > { %v1258_v59 = vcombine.low %v1204_v39, %v1214_v38  ;;  %v1217_v61 = vsel %vm773_vm10, %v1172_v8, 0.0  ;;  %v1243_v18 = vadd.f32 %v1242_v29, %v1240_v9 }
 0x12c   : > { %v1218_v14 = vadd.f32 %v1217_v61, %v1216_v63  ;;  %v1227_v4 = vsel %vm773_vm10, %v1173_v15, 0.0  ;;  %vm1308_vm10 = vcmp.lt.s32.totalorder %v215_v0, 784 }
 0x12d   : > { %v1273_v3 = vrot.slane %v1258_v59, %v2193_v62  ;;  %v1228_v5 = vadd.f32 %v1227_v4, %v1226_v2  ;;  %v1244_v11 = vrot.slane %v1243_v18, 4 }
 0x12e   : > { %v1219_v36 = vrot.slane %v1218_v14, 4 }
 0x12f   : > { %v1288_v37 = vcombine.low %v1266_v20, %v1273_v3  ;;  %v1229_v13 = vrot.slane %v1228_v5, 4  ;;  %v1245_v54 = vadd.f32 %v1244_v11, %v1243_v18 }
 0x130   : > { %v1220_v7 = vadd.f32 %v1219_v36, %v1218_v14 }
 0x131   : > { %v1230_v40 = vadd.f32 %v1229_v13, %v1228_v5  ;;  %v1246_v22 = vrot.slane %v1245_v54, 2  ;;  %v1296_v10 = vrot.slane %v1288_v37, %v2193_v62 }
 0x132   : > { %v1221_v41 = vrot.slane %v1220_v7, 2 }
 0x133   : > { %v1231_v12 = vrot.slane %v1230_v40, 2  ;;  %v1247_v58 = vadd.f32 %v1246_v22, %v1245_v54 }
 0x134   : > { %v1222_v42 = vadd.f32 %v1221_v41, %v1220_v7 }
 0x135   : > { %v1232_v60 = vadd.f32 %v1231_v12, %v1230_v40  ;;  %v1248_v28 = vrot.slane %v1247_v58, 1 }
 0x136   : > { %v1223_v55 = vrot.slane %v1222_v42, 1 }
 0x137   : > { %v1233_v43 = vrot.slane %v1232_v60, 1  ;;  %v1249_v17 = vadd.f32 %v1248_v28, %v1247_v58 }
 0x138   : > { %v1224_v25 = vadd.f32 %v1223_v55, %v1222_v42 }
 0x139   : > { %v1234_v56 = vadd.f32 %v1233_v43, %v1232_v60  ;;  %v1287_v27 = vrot.slane %v1249_v17, %v2193_v62 }
 0x13b   : > { %v1259_v30 = vcombine.low %v1224_v25, %v1234_v56 }
 0x13d   : > { %v1280_v23 = vrot.slane %v1259_v30, %v2193_v62 }
 0x13f   : > { %v1289_v31 = vcombine.low %v1280_v23, %v1287_v27 }
 0x141   : > { %v1303_v47 = vrot.slane %v1289_v31, %v2193_v62 }
 0x143   : > { %v1304_v48 = vcombine.low %v1296_v10, %v1303_v47 }
 0x145   : > { %1310 = vst.msk [vmem:[%s202_s27] sm:$0x7f] %vm1308_vm10, %v1304_v48 }
 0x146 PF: > { %s13_s12 = sadd.s32 1, %s1505_s12  }
 0x147   : > { %p10_p4 = scmp.ge.s32.totalorder %s13_s12, 4  }
 0x149   :  { %12 = sbr.rel (!%p10_p4) target bundleno = 1 (0x1), region = 68 }

// kernel: qnetwork_forward.9
= control target key start
LH: loop header
LB: loop body
LE: loop exit
PB: predicated region body
PF: predicated region fallthrough
CT: control target
= control target key end

     0   :  { %vm75_vm0 = vcmask 1043456   ;;  %v682_v3 = vmov 0.0   ;;  %v683_v8 = vmov 0.0|0.0   ;;  %vm684_vm1 = vmmov 1   ;;  %s986_s1 = inlined_call_operand.vmem [shape: f32[28,200], index: 1, kind: input, shape index: {}]   ;;  %s987_s3 = inlined_call_operand.vmem [shape: f32[200,100], index: 3, kind: input, shape index: {}]   ;;  %s988_s0 = inlined_call_operand.vmem [shape: f32[56,28], index: 0, kind: input, shape index: {}]   ;;  %s989_s5 = inlined_call_operand.vmem [shape: f32[100,4], index: 5, kind: input, shape index: {}]   ;;  %s990_s2 = inlined_call_operand.vmem [shape: f32[1,200], index: 2, kind: input, shape index: {}]   ;;  %s991_s4 = inlined_call_operand.vmem [shape: f32[1,100], index: 4, kind: input, shape index: {}]   ;;  %s992_s6 = inlined_call_operand.vmem [shape: f32[1,4], index: 6, kind: input, shape index: {}]   ;;  %s993_s7 = inlined_call_operand.vmem [shape: f32[56,4], index: 7, kind: output, shape index: {}]  }
   0x1   :  { %v34_v0 = vld [vmem:[%s986_s1 + $0x8] sm:$0xff]  ;;  %v36_v1 = vld [vmem:[%s986_s1 + $0x18] sm:$0xff]  ;;  %v33_v2 = vld [vmem:[%s986_s1] sm:$0xff]  ;;  %146 = vmatprep.mubr.f32.mxu0 %v682_v3  ;;  %624 = vmatprep.subr.bf16.mxu1 %v683_v8  ;;  %vm53_vm3 = vcmask 228352   ;;  %vm235_vm4 = vcmask 588800   ;;  %vm685_vm5 = vmmov 0  }
   0x2   :  { %v614_v4 = vpack.c.bf16 %v36_v1, %v34_v0  ;;  %v35_v5 = vld [vmem:[%s986_s1 + $0x10] sm:$0xff]  ;;  %v38_v6 = vld [vmem:[%s986_s1 + $0x28] sm:$0xff]  ;;  %v40_v7 = vld [vmem:[%s986_s1 + $0x38] sm:$0xf]  ;;  %vm384_vm6 = vcmask 818176   ;;  %vm509_vm7 = vcmask 31744  }
   0x3   :  { %v616_v9 = vpack.c.bf16 %v35_v5, %v33_v2  ;;  %v618_v10 = vpack.c.bf16 %v40_v7, %v38_v6  ;;  %vm619_vm2 = vmpackc.low %vm75_vm0, %vm684_vm1  ;;  %v37_v11 = vld [vmem:[%s986_s1 + $0x20] sm:$0xff]  ;;  %v39_v12 = vld [vmem:[%s986_s1 + $0x30] sm:$0xf] }
   0x4   :  { %615 = vmatprep.subr.bf16.mxu0 %v614_v4  ;;  %v621_v13 = vpack.c.bf16 %v39_v12, %v37_v11  ;;  %v203_v14 = vld [vmem:[%s987_s3] sm:$0xff]  ;;  %v204_v15 = vld [vmem:[%s987_s3 + $0x8] sm:$0xff]  ;;  %v205_v17 = vld [vmem:[%s987_s3 + $0x10] sm:$0xff] }
   0x5   :  { %617 = vmatpush1.bf16.msra.mxu0 %v616_v9  ;;  %v625_v16 = vpack.c.bf16 %v204_v15, %v203_v14  ;;  %v206_v18 = vld [vmem:[%s987_s3 + $0x18] sm:$0xff]  ;;  %v26_v19 = vld [vmem:[%s988_s0] sm:$0xff]  ;;  %v208_v22 = vld [vmem:[%s987_s3 + $0x28] sm:$0xff]  ;;  %v43_v14 = vlaneseq }
   0x6   :  { %620 = vmatprep.subr.msk.bf16.mxu0 %vm619_vm2, %v618_v10  ;;  %v628_v20 = vpack.c.bf16 %v206_v18, %v205_v17  ;;  %v207_v21 = vld [vmem:[%s987_s3 + $0x20] sm:$0xff]  ;;  %v27_v23 = vld [vmem:[%s988_s0 + $0x8] sm:$0xff]  ;;  %v209_v25 = vld [vmem:[%s987_s3 + $0x30] sm:$0xff] }
   0x7   :  { %626 = vmatpush1.bf16.msra.mxu1 %v625_v16  ;;  %v631_v24 = vpack.c.bf16 %v208_v22, %v207_v21  ;;  %v210_v26 = vld [vmem:[%s987_s3 + $0x38] sm:$0xff]  ;;  %v28_v27 = vld [vmem:[%s988_s0 + $0x10] sm:$0xff]  ;;  %v211_v29 = vld [vmem:[%s987_s3 + $0x40] sm:$0xff]  ;;  %v44_v15 = vshrl.u32 %v43_v14, 7 }
   0x8   :  { %627 = vmatprep.subr.bf16.mxu1 %v683_v8  ;;  %v634_v28 = vpack.c.bf16 %v210_v26, %v209_v25  ;;  %v212_v30 = vld [vmem:[%s987_s3 + $0x48] sm:$0xff]  ;;  %v29_v31 = vld [vmem:[%s988_s0 + $0x18] sm:$0xff]  ;;  %v213_v33 = vld [vmem:[%s987_s3 + $0x50] sm:$0xff] }
   0x9   :  { %623 = vmatpush1.bf16.msk.msra.mxu0 %vm619_vm2, %v621_v13  ;;  %v637_v32 = vpack.c.bf16 %v212_v30, %v211_v29  ;;  %v214_v34 = vld [vmem:[%s987_s3 + $0x58] sm:$0xff]  ;;  %v30_v35 = vld [vmem:[%s988_s0 + $0x20] sm:$0xff]  ;;  %v216_v38 = vld [vmem:[%s987_s3 + $0x68] sm:$0xff]  ;;  %v45_v16 = vsub.s32 0, %v44_v15  ;;  %v49_v18 = vsub.s32 1, %v44_v15 }
   0xa   :  { %660 = vmatprep.subr.bf16.mxu0 %v683_v8  ;;  %v640_v36 = vpack.c.bf16 %v214_v34, %v213_v33  ;;  %v215_v37 = vld [vmem:[%s987_s3 + $0x60] sm:$0xff]  ;;  %v31_v39 = vld [vmem:[%s988_s0 + $0x28] sm:$0xff]  ;;  %v217_v41 = vld [vmem:[%s987_s3 + $0x70] sm:$0xff] }
   0xb   :  { %629 = vmatpush1.bf16.msra.mxu1 %v628_v20  ;;  %v643_v40 = vpack.c.bf16 %v216_v38, %v215_v37  ;;  %v218_v42 = vld [vmem:[%s987_s3 + $0x78] sm:$0xff]  ;;  %v32_v43 = vld [vmem:[%s988_s0 + $0x30] sm:$0xff]  ;;  %v219_v45 = vld [vmem:[%s987_s3 + $0x80] sm:$0xff] }
   0xc   :  { %523 = vmatmul.mubr.msk.f32.vlgmr.msra.gmra.mrb[0].mxu0 %vm53_vm3, %v26_v19  ;;  %630 = vmatprep.subr.bf16.mxu1 %v683_v8  ;;  %v646_v44 = vpack.c.bf16 %v218_v42, %v217_v41  ;;  %v220_v46 = vld [vmem:[%s987_s3 + $0x88] sm:$0xff]  ;;  %v221_v48 = vld [vmem:[%s987_s3 + $0x90] sm:$0xff]  ;;  %v222_v49 = vld [vmem:[%s987_s3 + $0x98] sm:$0xff] }
   0xd   :  { %152 = vmatprep.mubr.f32.mxu0 %v682_v3  ;;  %v649_v47 = vpack.c.bf16 %v220_v46, %v219_v45  ;;  %v652_v50 = vpack.c.bf16 %v222_v49, %v221_v48  ;;  %v223_v51 = vld [vmem:[%s987_s3 + $0xa0] sm:$0xff]  ;;  %v224_v52 = vld [vmem:[%s987_s3 + $0xa8] sm:$0xff]  ;;  %v225_v54 = vld [vmem:[%s987_s3 + $0xb0] sm:$0xff] }
   0xe   :  { %v655_v53 = vpack.c.bf16 %v224_v52, %v223_v51  ;;  %v226_v55 = vld [vmem:[%s987_s3 + $0xb8] sm:$0xff]  ;;  %v227_v57 = vld [vmem:[%s987_s3 + $0xc0] sm:$0xff]  ;;  %v365_v59 = vld [vmem:[%s989_s5 + $0x8] sm:$0xff] }
   0xf   :  { %632 = vmatpush1.bf16.msra.mxu1 %v631_v24  ;;  %v658_v56 = vpack.c.bf16 %v226_v55, %v225_v54  ;;  %v364_v58 = vld [vmem:[%s989_s5] sm:$0xff]  ;;  %v366_v60 = vld [vmem:[%s989_s5 + $0x10] sm:$0xff]  ;;  %v367_v62 = vld [vmem:[%s989_s5 + $0x18] sm:$0xff] }
  0x10   :  { %524 = vmatmul.mubr.msk.f32.gmra.mrb[2].mxu0 %vm53_vm3, %v27_v23  ;;  %633 = vmatprep.subr.bf16.mxu1 %v683_v8  ;;  %v661_v61 = vpack.c.bf16 %v365_v59, %v364_v58  ;;  %v664_v63 = vpack.c.bf16 %v367_v62, %v366_v60  ;;  %v368_v0 = vld [vmem:[%s989_s5 + $0x20] sm:$0xff]  ;;  %v369_v1 = vld [vmem:[%s989_s5 + $0x28] sm:$0xff]  ;;  %v370_v4 = vld [vmem:[%s989_s5 + $0x30] sm:$0xff] }
  0x11   :  { %158 = vmatprep.mubr.f32.mxu0 %v682_v3  ;;  %v667_v2 = vpack.c.bf16 %v369_v1, %v368_v0  ;;  %v371_v5 = vld [vmem:[%s989_s5 + $0x38] sm:$0xff]  ;;  %v372_v7 = vld [vmem:[%s989_s5 + $0x40] sm:$0xff]  ;;  %v373_v9 = vld [vmem:[%s989_s5 + $0x48] sm:$0xff] }
  0x12   :  { %662 = vmatpush3.bf16.msra.mxu0 %v661_v61  ;;  %v670_v6 = vpack.c.bf16 %v371_v5, %v370_v4  ;;  %v673_v10 = vpack.c.bf16 %v373_v9, %v372_v7  ;;  %v374_v11 = vld [vmem:[%s989_s5 + $0x50] sm:$0xff]  ;;  %v375_v12 = vld [vmem:[%s989_s5 + $0x58] sm:$0xff]  ;;  %v41_v17 = vld [vmem:[%s990_s2] sm:$0x3] }
  0x13   :  { %635 = vmatpush1.bf16.msra.mxu1 %v634_v28  ;;  %663 = vmatprep.subr.bf16.mxu0 %v683_v8  ;;  %v676_v13 = vpack.c.bf16 %v375_v12, %v374_v11  ;;  %v46_v19 = vrot.slane %v41_v17, %v45_v16  ;;  %v50_v20 = vrot.slane %v41_v17, %v49_v18  ;;  %v376_v62 = vld [vmem:[%s989_s5 + $0x60] sm:$0xf] }
  0x14   :  { %525 = vmatmul.mubr.msk.f32.gmra.mrb[4].mxu0 %vm53_vm3, %v28_v27  ;;  %636 = vmatprep.subr.bf16.mxu1 %v683_v8 }
  0x15   :  { %164 = vmatprep.mubr.f32.mxu0 %v682_v3 }
  0x16   :  { %665 = vmatpush3.bf16.msra.mxu0 %v664_v63  ;;  %v530_v63 = vld [vmem:[%s991_s4] ss:$0 sm:$0xff] }
  0x17   :  { %638 = vmatpush1.bf16.msra.mxu1 %v637_v32  ;;  %666 = vmatprep.subr.bf16.mxu0 %v683_v8 }
  0x18   :  { %526 = vmatmul.mubr.msk.f32.gmra.mrb[6].mxu0 %vm53_vm3, %v29_v31  ;;  %639 = vmatprep.subr.bf16.mxu1 %v683_v8 }
  0x19   :  { %170 = vmatprep.mubr.f32.mxu0 %v682_v3 }
  0x1a   :  { %668 = vmatpush3.bf16.msra.mxu0 %v667_v2 }
  0x1b   :  { %641 = vmatpush1.bf16.msra.mxu1 %v640_v36  ;;  %669 = vmatprep.subr.bf16.mxu0 %v683_v8 }
  0x1c   :  { %527 = vmatmul.mubr.msk.f32.gmra.mrb[8].mxu0 %vm53_vm3, %v30_v35  ;;  %642 = vmatprep.subr.bf16.mxu1 %v683_v8 }
  0x1d   :  { %176 = vmatprep.mubr.f32.mxu0 %v682_v3 }
  0x1e   :  { %671 = vmatpush3.bf16.msra.mxu0 %v670_v6 }
  0x1f   :  { %644 = vmatpush1.bf16.msra.mxu1 %v643_v40  ;;  %672 = vmatprep.subr.bf16.mxu0 %v683_v8 }
  0x20   :  { %528 = vmatmul.mubr.msk.f32.gmra.mrb[10].mxu0 %vm53_vm3, %v31_v39  ;;  %645 = vmatprep.subr.bf16.mxu1 %v683_v8 }
  0x21   :  { %182 = vmatprep.mubr.f32.mxu0 %v682_v3 }
  0x22   :  { %674 = vmatpush3.bf16.msra.mxu0 %v673_v10 }
  0x23   :  { %647 = vmatpush1.bf16.msra.mxu1 %v646_v44  ;;  %675 = vmatprep.subr.bf16.mxu0 %v683_v8 }
  0x24   :  { %529 = vmatmul.mubr.msk.f32.gmra.mrb[12].mxu0 %vm53_vm3, %v32_v43  ;;  %648 = vmatprep.subr.bf16.mxu1 %v683_v8 }
  0x25   :  { %593 = vmatprep.mubr.msk.f32.mxu0 %vm685_vm5, %v682_v3 }
  0x26   :  { %677 = vmatpush3.bf16.msra.mxu0 %v676_v13 }
  0x27   :  { %650 = vmatpush1.bf16.msra.mxu1 %v649_v47  ;;  %591 = vmatprep.subr.mxu0 %v682_v3 }
  0x28   :  { %651 = vmatprep.subr.bf16.mxu1 %v683_v8 }
  0x2a   :  { %592 = vmatpush3.msk.msra.mxu0 %vm75_vm0, %v376_v62 }
  0x2b   :  { %653 = vmatpush1.bf16.msra.mxu1 %v652_v50 }
  0x2c   :  { %654 = vmatprep.subr.bf16.mxu1 %v683_v8 }
  0x2f   :  { %656 = vmatpush1.bf16.msra.mxu1 %v655_v53 }
  0x30   :  { %657 = vmatprep.subr.bf16.mxu1 %v683_v8 }
  0x33   :  { %659 = vmatpush1.bf16.msra.mxu1 %v658_v56 }
  0x34   :  { %305 = vmatprep.subr.mxu1 %v682_v3 }
  0x37   :  { %306 = vmatpush1.msra.mxu1 %v227_v57 }
  0xdf   :  { %v148_v21 = vpop.f32.mrb[0].mxu0 }
  0xe0   :  { %v149_v22 = vadd.f32 %v148_v21, %v46_v19  ;;  %v150_v23 = vpop.f32.mrb[1].mxu0 }
  0xe1   :  { %v151_v24 = vadd.f32 %v150_v23, %v50_v20 }
  0xe2   :  { %v189_v26 = vmax.f32 %v149_v22, 0.0 }
  0xe3   :  { %v190_v25 = vmax.f32 %v151_v24, 0.0  ;;  %v154_v8 = vpop.f32.mrb[2].mxu0 }
  0xe4   :  { %v155_v27 = vadd.f32 %v154_v8, %v46_v19  ;;  %v156_v28 = vpop.f32.mrb[3].mxu0 }
  0xe5   :  { %v157_v29 = vadd.f32 %v156_v28, %v50_v20  ;;  %531 = vmatprep.mubr.msk.f32.mxu1 %vm235_vm4, %v190_v25 }
  0xe6   :  { %322 = vmatmul.mubr.f32.vlgmr.msra.gmra.mrb[0].mxu1 %v189_v26  ;;  %v191_v32 = vmax.f32 %v155_v27, 0.0 }
  0xe7   :  { %v192_v30 = vmax.f32 %v157_v29, 0.0  ;;  %v160_v31 = vpop.f32.mrb[4].mxu0  ;;  %v538_v29 = vld [vmem:[%s992_s6] ss:$0 sm:$0xff] }
  0xe8   :  { %v161_v33 = vadd.f32 %v160_v31, %v46_v19  ;;  %v162_v34 = vpop.f32.mrb[5].mxu0 }
  0xe9   :  { %v163_v35 = vadd.f32 %v162_v34, %v50_v20  ;;  %532 = vmatprep.mubr.msk.f32.mxu1 %vm235_vm4, %v192_v30 }
  0xea   :  { %327 = vmatmul.mubr.f32.gmra.mrb[2].mxu1 %v191_v32  ;;  %v193_v38 = vmax.f32 %v161_v33, 0.0 }
  0xeb   :  { %v194_v36 = vmax.f32 %v163_v35, 0.0  ;;  %v166_v37 = vpop.f32.mrb[6].mxu0 }
  0xec   :  { %v167_v39 = vadd.f32 %v166_v37, %v46_v19  ;;  %v168_v40 = vpop.f32.mrb[7].mxu0 }
  0xed   :  { %v169_v41 = vadd.f32 %v168_v40, %v50_v20  ;;  %533 = vmatprep.mubr.msk.f32.mxu1 %vm235_vm4, %v194_v36 }
  0xee   :  { %332 = vmatmul.mubr.f32.gmra.mrb[4].mxu1 %v193_v38  ;;  %v195_v44 = vmax.f32 %v167_v39, 0.0 }
  0xef   :  { %v196_v42 = vmax.f32 %v169_v41, 0.0  ;;  %v172_v43 = vpop.f32.mrb[8].mxu0 }
  0xf0   :  { %v173_v45 = vadd.f32 %v172_v43, %v46_v19  ;;  %v174_v46 = vpop.f32.mrb[9].mxu0 }
  0xf1   :  { %v175_v47 = vadd.f32 %v174_v46, %v50_v20  ;;  %534 = vmatprep.mubr.msk.f32.mxu1 %vm235_vm4, %v196_v42 }
  0xf2   :  { %337 = vmatmul.mubr.f32.gmra.mrb[6].mxu1 %v195_v44  ;;  %v197_v50 = vmax.f32 %v173_v45, 0.0 }
  0xf3   :  { %v198_v48 = vmax.f32 %v175_v47, 0.0  ;;  %v178_v49 = vpop.f32.mrb[10].mxu0 }
  0xf4   :  { %v179_v51 = vadd.f32 %v178_v49, %v46_v19  ;;  %v180_v52 = vpop.f32.mrb[11].mxu0 }
  0xf5   :  { %v181_v53 = vadd.f32 %v180_v52, %v50_v20  ;;  %535 = vmatprep.mubr.msk.f32.mxu1 %vm235_vm4, %v198_v48 }
  0xf6   :  { %342 = vmatmul.mubr.f32.gmra.mrb[8].mxu1 %v197_v50  ;;  %v199_v56 = vmax.f32 %v179_v51, 0.0 }
  0xf7   :  { %v200_v54 = vmax.f32 %v181_v53, 0.0  ;;  %v184_v55 = vpop.f32.mrb[12].mxu0 }
  0xf8   :  { %v185_v57 = vadd.f32 %v184_v55, %v46_v19  ;;  %v186_v58 = vpop.f32.mrb[13].mxu0 }
  0xf9   :  { %v187_v59 = vadd.f32 %v186_v58, %v50_v20  ;;  %536 = vmatprep.mubr.msk.f32.mxu1 %vm235_vm4, %v200_v54 }
  0xfa   :  { %347 = vmatmul.mubr.f32.gmra.mrb[10].mxu1 %v199_v56  ;;  %v201_v61 = vmax.f32 %v185_v57, 0.0 }
  0xfb   :  { %v202_v60 = vmax.f32 %v187_v59, 0.0 }
  0xfd   :  { %537 = vmatprep.mubr.msk.f32.mxu1 %vm235_vm4, %v202_v60 }
  0xfe   :  { %352 = vmatmul.mubr.f32.gmra.mrb[12].mxu1 %v201_v61 }
 0x1b9   :  { %v323_v0 = vpop.f32.mrb[0].mxu1 }
 0x1ba   :  { %v324_v1 = vadd.f32 %v530_v63, %v323_v0  ;;  %v325_v2 = vpop.f32.mrb[1].mxu1 }
 0x1bc   :  { %v357_v4 = vmax.f32 %v324_v1, 0.0 }
 0x1bd   :  { %v328_v5 = vpop.f32.mrb[2].mxu1 }
 0x1be   :  { %v329_v6 = vadd.f32 %v530_v63, %v328_v5  ;;  %v330_v7 = vpop.f32.mrb[3].mxu1  ;;  %594 = vmatmul.mubr.msk.f32.vlgmr.msra.gmra.mrb[14].mxu0 %vm384_vm6, %v357_v4 }
 0x1bf   :  { %596 = vmatprep.mubr.msk.f32.mxu0 %vm685_vm5, %v682_v3 }
 0x1c0   :  { %v358_v9 = vmax.f32 %v329_v6, 0.0 }
 0x1c1   :  { %v333_v10 = vpop.f32.mrb[4].mxu1 }
 0x1c2   :  { %v334_v11 = vadd.f32 %v530_v63, %v333_v10  ;;  %v335_v12 = vpop.f32.mrb[5].mxu1  ;;  %597 = vmatmul.mubr.msk.f32.gmra.mrb[16].mxu0 %vm384_vm6, %v358_v9 }
 0x1c3   :  { %599 = vmatprep.mubr.msk.f32.mxu0 %vm685_vm5, %v682_v3 }
 0x1c4   :  { %v359_v13 = vmax.f32 %v334_v11, 0.0 }
 0x1c5   :  { %v338_v14 = vpop.f32.mrb[6].mxu1 }
 0x1c6   :  { %v339_v15 = vadd.f32 %v530_v63, %v338_v14  ;;  %v340_v16 = vpop.f32.mrb[7].mxu1  ;;  %600 = vmatmul.mubr.msk.f32.gmra.mrb[18].mxu0 %vm384_vm6, %v359_v13 }
 0x1c7   :  { %602 = vmatprep.mubr.msk.f32.mxu0 %vm685_vm5, %v682_v3 }
 0x1c8   :  { %v360_v17 = vmax.f32 %v339_v15, 0.0 }
 0x1c9   :  { %v343_v18 = vpop.f32.mrb[8].mxu1 }
 0x1ca   :  { %v344_v19 = vadd.f32 %v530_v63, %v343_v18  ;;  %v345_v20 = vpop.f32.mrb[9].mxu1  ;;  %603 = vmatmul.mubr.msk.f32.gmra.mrb[20].mxu0 %vm384_vm6, %v360_v17 }
 0x1cb   :  { %605 = vmatprep.mubr.msk.f32.mxu0 %vm685_vm5, %v682_v3 }
 0x1cc   :  { %v361_v21 = vmax.f32 %v344_v19, 0.0 }
 0x1cd   :  { %v348_v22 = vpop.f32.mrb[10].mxu1 }
 0x1ce   :  { %v349_v23 = vadd.f32 %v530_v63, %v348_v22  ;;  %v350_v24 = vpop.f32.mrb[11].mxu1  ;;  %606 = vmatmul.mubr.msk.f32.gmra.mrb[22].mxu0 %vm384_vm6, %v361_v21 }
 0x1cf   :  { %608 = vmatprep.mubr.msk.f32.mxu0 %vm685_vm5, %v682_v3 }
 0x1d0   :  { %v362_v25 = vmax.f32 %v349_v23, 0.0 }
 0x1d1   :  { %v353_v8 = vpop.f32.mrb[12].mxu1 }
 0x1d2   :  { %v354_v26 = vadd.f32 %v530_v63, %v353_v8  ;;  %v355_v27 = vpop.f32.mrb[13].mxu1  ;;  %609 = vmatmul.mubr.msk.f32.gmra.mrb[24].mxu0 %vm384_vm6, %v362_v25 }
 0x1d3   :  { %611 = vmatprep.mubr.msk.f32.mxu0 %vm685_vm5, %v682_v3 }
 0x1d4   :  { %v363_v28 = vmax.f32 %v354_v26, 0.0 }
 0x1d6   :  { %612 = vmatmul.mubr.msk.f32.gmra.mrb[26].mxu0 %vm384_vm6, %v363_v28 }
 0x291   :  { %v475_v30 = vpop.f32.mrb[14].mxu0 }
 0x292   :  { %v476_v31 = vadd.f32 %v538_v29, %v475_v30  ;;  %v595_v32 = vpop.f32.mrb[15].mxu0 }
 0x294   :  { %510 = vst.msk [vmem:[%s993_s7] sm:$0xff] %vm509_vm7, %v476_v31 }
 0x295   :  { %v480_v33 = vpop.f32.mrb[16].mxu0 }
 0x296   :  { %v481_v34 = vadd.f32 %v538_v29, %v480_v33  ;;  %v598_v35 = vpop.f32.mrb[17].mxu0 }
 0x298   :  { %511 = vst.msk [vmem:[%s993_s7 + $0x8] sm:$0xff] %vm509_vm7, %v481_v34 }
 0x299   :  { %v485_v3 = vpop.f32.mrb[18].mxu0 }
 0x29a   :  { %v486_v36 = vadd.f32 %v538_v29, %v485_v3  ;;  %v601_v37 = vpop.f32.mrb[19].mxu0 }
 0x29c   :  { %512 = vst.msk [vmem:[%s993_s7 + $0x10] sm:$0xff] %vm509_vm7, %v486_v36 }
 0x29d   :  { %v490_v38 = vpop.f32.mrb[20].mxu0 }
 0x29e   :  { %v491_v39 = vadd.f32 %v538_v29, %v490_v38  ;;  %v604_v40 = vpop.f32.mrb[21].mxu0 }
 0x2a0   :  { %513 = vst.msk [vmem:[%s993_s7 + $0x18] sm:$0xff] %vm509_vm7, %v491_v39 }
 0x2a1   :  { %v495_v41 = vpop.f32.mrb[22].mxu0 }
 0x2a2   :  { %v496_v42 = vadd.f32 %v538_v29, %v495_v41  ;;  %v607_v43 = vpop.f32.mrb[23].mxu0 }
 0x2a4   :  { %514 = vst.msk [vmem:[%s993_s7 + $0x20] sm:$0xff] %vm509_vm7, %v496_v42 }
 0x2a5   :  { %v500_v44 = vpop.f32.mrb[24].mxu0 }
 0x2a6   :  { %v501_v45 = vadd.f32 %v538_v29, %v500_v44  ;;  %v610_v46 = vpop.f32.mrb[25].mxu0 }
 0x2a8   :  { %515 = vst.msk [vmem:[%s993_s7 + $0x28] sm:$0xff] %vm509_vm7, %v501_v45 }
 0x2a9   :  { %v505_v47 = vpop.f32.mrb[26].mxu0 }
 0x2aa   :  { %v506_v48 = vadd.f32 %v538_v29, %v505_v47  ;;  %v613_v49 = vpop.f32.mrb[27].mxu0 }
 0x2ac   :  { %516 = vst.msk [vmem:[%s993_s7 + $0x30] sm:$0xff] %vm509_vm7, %v506_v48 }

</bundles_post_ra>
